<compile_context>
chip_gen: v5e
topology: v5e:2x2
jax: 0.10.0
libtpu: 0.0.40
codegen_flags: <defaults>
</compile_context>

<pallas_src>
import math
import functools

import jax
import jax.numpy as jnp
from jax.experimental import pallas as pl
from jax.experimental.pallas import tpu as pltpu


def _ceil128(d):
    return max(128, ((d + 127) // 128) * 128)


# ----------------------------- Pallas kernel --------------------------------

def fused_net_kernel(*refs, block_meta):
    """Whole network in one kernel invocation.

    Activation slab `a` is (Nsub, D): batch on sublanes, flattened c-major /
    l-minor features on lanes; every D is padded to a multiple of 128 so all
    dots and slices are tile aligned and padded lanes stay exactly zero.

    refs = [x_slab,
            block w/ skip : (Wcat=[W1.T|Wskip.T] bf16, b1, bskip, W2.T bf16, b2),
            block w/o skip: (W1.T bf16, b1, W2.T bf16, b2),
            lw (1, Dlast) f32, lb (1, 1) f32,
            logits_out (Nsub, 1), feat_out (Nsub, Dlast)]
    """
    n_in = 1 + sum(5 if hs else 4 for hs in block_meta) + 2
    in_refs = refs[:n_in]
    logits_ref, feat_ref = refs[n_in], refs[n_in + 1]

    idx = 0
    a = in_refs[idx][...]              # (Nsub, D0) f32, zero in padded lanes
    idx += 1

    for has_skip in block_meta:
        if has_skip:
            wcat = in_refs[idx][...]       # (Din, 2*Dout) bf16
            b1 = in_refs[idx + 1][...]     # (1, Dout) f32
            bs = in_refs[idx + 2][...]     # (1, Dout) f32
            w2 = in_refs[idx + 3][...]     # (Dout, Dout) bf16
            b2 = in_refs[idx + 4][...]     # (1, Dout) f32
            idx += 5
            d_out = w2.shape[0]
            # conv1 and skip-conv share the same LHS -> one MXU pass, then a
            # lane-tile-aligned (multiple-of-128) split of the result.
            pre = jnp.dot(a.astype(jnp.bfloat16), wcat,
                          preferred_element_type=jnp.float32)
            h = jnp.maximum(pre[:, :d_out] + b1, 0.0)
            skip = pre[:, d_out:] + bs
        else:
            w1 = in_refs[idx][...]
            b1 = in_refs[idx + 1][...]
            w2 = in_refs[idx + 2][...]
            b2 = in_refs[idx + 3][...]
            idx += 4
            skip = a                       # identity skip (ci == co, stride == 1)
            h = jnp.maximum(
                jnp.dot(a.astype(jnp.bfloat16), w1,
                        preferred_element_type=jnp.float32) + b1, 0.0)
        a = jnp.maximum(
            jnp.dot(h.astype(jnp.bfloat16), w2,
                    preferred_element_type=jnp.float32) + b2 + skip, 0.0)

    lw = in_refs[idx][...]             # (1, Dlast) f32, zero in padded lanes
    lb = in_refs[idx + 1][...]         # (1, 1) f32

    feat_ref[...] = a.astype(feat_ref.dtype)
    # Final Linear (F -> 1): VPU multiply + cross-lane (XLU) reduction.
    logits_ref[...] = (jnp.sum(a * lw, axis=-1, keepdims=True) + lb
                       ).astype(logits_ref.dtype)


def _full_spec(shape):
    # Whole array as one block (block_shape == array shape is always legal).
    n = len(shape)
    return pl.BlockSpec(shape, lambda i, _n=n: (0,) * _n)


# --------------------- host-side weight preparation --------------------------

def fold_bn(w, b, bn):
    """Fold eval-mode BatchNorm1d into the preceding conv weight/bias."""
    gamma, beta, mean, var, eps = bn
    s = gamma / jnp.sqrt(var + eps)
    return w * s[:, None, None], s * b + beta - s * mean


def conv_to_dense(w, b, l_in, stride, pad):
    """Expand Conv1d weights into a dense Toeplitz matmul (Ci*Lin)->(Co*Lout).

    w: (Co, Ci, k), b: (Co,)  ->  W_full (Co*Lout, Ci*Lin), b_full (Co*Lout,)
    """
    co, ci, k = w.shape
    l_out = (l_in + 2 * pad - k) // stride + 1
    li = jnp.arange(l_in)
    lo = jnp.arange(l_out)
    kk = jnp.arange(k)
    # sel[k, i, j] = 1 iff i == j*stride + k - pad (out-of-range => zero pad)
    tgt = lo[None, None, :] * stride + kk[:, None, None] - pad      # (k, 1, Lout)
    sel = (li[None, :, None] == tgt).astype(jnp.float32)            # (k, Lin, Lout)
    w_full = jnp.einsum("ock,kij->ojci", w, sel).reshape(co * l_out, ci * l_in)
    b_full = jnp.repeat(b, l_out)                                    # (Co*Lout,)
    return w_full, b_full, l_out


def _pad2(m, rows, cols):
    return jnp.pad(m, ((0, rows - m.shape[0]), (0, cols - m.shape[1])))


def prepare_model(params, input_channels, l_in):
    """Fold BN, build transposed Toeplitz weights (bf16), pad dims to 128,
    stack conv1+skip columns.  Runs once, outside the hot path."""
    weights = []
    block_meta = []
    l_cur, ci = l_in, input_channels
    d_in_pad = _ceil128(ci * l_cur)
    for p in params["layers"]:
        stride = p["stride"]
        co = int(p["conv1"][0].shape[0])
        w1, b1 = fold_bn(*p["conv1"], p["bn1"])
        w2, b2 = fold_bn(*p["conv2"], p["bn2"])
        w1f, b1f, l_out = conv_to_dense(w1, b1, l_cur, stride, 1)
        w2f, b2f, _ = conv_to_dense(w2, b2, l_out, 1, 1)
        d_out_pad = _ceil128(co * l_out)

        w1t = _pad2(w1f.T, d_in_pad, d_out_pad).astype(jnp.bfloat16)
        b1r = _pad2(b1f.reshape(1, -1), 1, d_out_pad).astype(jnp.float32)
        w2t = _pad2(w2f.T, d_out_pad, d_out_pad).astype(jnp.bfloat16)
        b2r = _pad2(b2f.reshape(1, -1), 1, d_out_pad).astype(jnp.float32)

        if p["has_skip"]:
            ws, bs = fold_bn(*p["skip_conv"], p["skip_bn"])
            wsf, bsf, l_skip = conv_to_dense(ws, bs, l_cur, stride, 0)
            assert l_skip == l_out
            wst = _pad2(wsf.T, d_in_pad, d_out_pad).astype(jnp.bfloat16)
            bsr = _pad2(bsf.reshape(1, -1), 1, d_out_pad).astype(jnp.float32)
            wcat = jnp.concatenate([w1t, wst], axis=1)   # (Din, 2*Dout)
            weights += [wcat, b1r, bsr, w2t, b2r]
        else:
            assert ci == co and stride == 1 and d_in_pad == _ceil128(co * l_out), \
                "identity skip requires ci == co and stride == 1"
            weights += [w1t, b1r, w2t, b2r]

        block_meta.append(bool(p["has_skip"]))
        l_cur, ci = l_out, co
        d_in_pad = d_out_pad

    lw, lb = params["linear"]                      # (1, F), (1,)
    lw_pad = _pad2(lw.reshape(1, -1), 1, d_in_pad).astype(jnp.float32)
    lb_r = lb.reshape(1, 1).astype(jnp.float32)
    weights += [lw_pad, lb_r]
    return tuple(weights), tuple(block_meta), ci, l_cur, d_in_pad


# ----------------------------- fused forward --------------------------------

def _fused_forward(x, weights, block_meta, co_f, l_f, d_last_pad):
    n, c, l = x.shape
    n_sub = ((n + 7) // 8) * 8                       # batch on sublanes
    d_in = c * l
    d_in_pad = _ceil128(d_in)

    # (N, C, L) -> (N, C*L) slab (c-major, l-minor, matching torch .view(N,-1)),
    # zero-padded to (Nsub, Dpad) so padded lanes stay exactly zero downstream.
    slab = jnp.pad(x.reshape(n, d_in),
                   ((0, n_sub - n), (0, d_in_pad - d_in)))

    args = (slab,) + tuple(weights)

    logits_slab, feat_slab = pl.pallas_call(
        functools.partial(fused_net_kernel, block_meta=block_meta),
        out_shape=(jax.ShapeDtypeStruct((n_sub, 1), jnp.float32),
                   jax.ShapeDtypeStruct((n_sub, d_last_pad), jnp.float32)),
        grid=(1,),
        in_specs=[_full_spec(a.shape) for a in args],
        out_specs=(_full_spec((n_sub, 1)), _full_spec((n_sub, d_last_pad))),
        compiler_params=pltpu.CompilerParams(
            dimension_semantics=("arbitrary",)),
    )(*args)

    logits = logits_slab[:n, :]                                       # (N, 1)
    out_feature = feat_slab[:n, :co_f * l_f].reshape(n, co_f, l_f)
    return logits, out_feature


fused_forward = jax.jit(
    _fused_forward,
    static_argnames=("block_meta", "co_f", "l_f", "d_last_pad"))


# ----------------------------- parameters -----------------------------------

def init_conv(key, co, ci, k):
    k1, k2 = jax.random.split(key)
    bound = 1.0 / math.sqrt(ci * k)
    w = jax.random.uniform(k1, (co, ci, k), jnp.float32, -bound, bound)
    b = jax.random.uniform(k2, (co,), jnp.float32, -bound, bound)
    return w, b


def init_bn(key, c, eps=1e-5):
    k1, k2, k3, k4 = jax.random.split(key, 4)
    gamma = jax.random.uniform(k1, (c,), jnp.float32, 0.5, 1.5)
    beta = jax.random.uniform(k2, (c,), jnp.float32, -0.2, 0.2)
    mean = jax.random.uniform(k3, (c,), jnp.float32, -0.2, 0.2)
    var = jax.random.uniform(k4, (c,), jnp.float32, 0.5, 1.5)
    return (gamma, beta, mean, var, eps)


def init_resblock(key, ci, co, stride):
    keys = jax.random.split(key, 6)
    p = {
        "stride": stride,
        "conv1": init_conv(keys[0], co, ci, 3),
        "bn1": init_bn(keys[1], co),
        "conv2": init_conv(keys[2], co, co, 3),
        "bn2": init_bn(keys[3], co),
        "has_skip": co != ci,
    }
    if p["has_skip"]:
        p["skip_conv"] = init_conv(keys[4], co, ci, 1)
        p["skip_bn"] = init_bn(keys[5], co)
    return p


def init_model(key, input_channels, final_out_channels, features_len):
    keys = jax.random.split(key, 7)
    layers = [
        init_resblock(keys[0], input_channels, 8, 1),
        init_resblock(keys[1], 8, 16, 2),
        init_resblock(keys[2], 16, 24, 2),
        init_resblock(keys[3], 24, 16, 1),
        init_resblock(keys[4], 16, final_out_channels, 1),
    ]
    F = final_out_channels * features_len
    bound = 1.0 / math.sqrt(F)
    lw = jax.random.uniform(keys[5], (1, F), jnp.float32, -bound, bound)
    lb = jax.random.uniform(keys[6], (1,), jnp.float32, -bound, bound)
    return {"layers": layers, "linear": (lw, lb)}


# ----------------------------- pure-JAX reference ----------------------------

def ref_conv1d(x, w, b, stride, pad):
    y = jax.lax.conv_general_dilated(
        x, w, window_strides=(stride,), padding=[(pad, pad)],
        dimension_numbers=("NCH", "OIH", "NCH"))
    return y + b[None, :, None]


def ref_bn(x, bn):
    gamma, beta, mean, var, eps = bn
    return gamma[None, :, None] * (x - mean[None, :, None]) / \
        jnp.sqrt(var[None, :, None] + eps) + beta[None, :, None]


def ref_resblock(x, p):
    s = p["stride"]
    h = jax.nn.relu(ref_bn(ref_conv1d(x, *p["conv1"], s, 1), p["bn1"]))
    h = ref_bn(ref_conv1d(h, *p["conv2"], 1, 1), p["bn2"])
    if p["has_skip"]:
        sk = ref_bn(ref_conv1d(x, *p["skip_conv"], s, 0), p["skip_bn"])
    else:
        sk = x
    return jax.nn.relu(sk + h)


def ref_model(x, params):
    out = x
    for p in params["layers"]:
        out = ref_resblock(out, p)
    lw, lb = params["linear"]
    logits = out.reshape(x.shape[0], -1) @ lw.T + lb[None, :]
    return logits, out


# ----------------------------------- main ------------------------------------

if __name__ == "__main__":
    # small config: batch=2, input_channels=4, seq_len=16 -> features_len=4
    N, C_IN, L = 2, 4, 16
    FINAL_OUT = 16
    FEATURES_LEN = 4  # L=16 -> stride2 -> 8 -> stride2 -> 4

    key = jax.random.PRNGKey(0)
    k_param, k_x = jax.random.split(key)
    params = init_model(k_param, C_IN, FINAL_OUT, FEATURES_LEN)
    x = jax.random.normal(k_x, (N, C_IN, L), jnp.float32)

    # one-time weight prep (BN fold + Toeplitz + pad/stack), outside the hot path
    weights, block_meta, co_f, l_f, d_last_pad = prepare_model(params, C_IN, L)
    assert co_f == FINAL_OUT and l_f == FEATURES_LEN

    logits, out_feature = fused_forward(
        x, weights, block_meta=block_meta, co_f=co_f, l_f=l_f,
        d_last_pad=d_last_pad)
    logits = jax.block_until_ready(logits)
    out_feature = jax.block_until_ready(out_feature)

    # sanity check against pure-JAX f32 reference (bf16 matmul operands with
    # f32 accumulation -> magnitude-relative tolerance)
    ref_logits, ref_feat = ref_model(x, params)
    assert logits.shape == (N, 1)
    assert out_feature.shape == (N, FINAL_OUT, FEATURES_LEN)
    tol_feat = 1e-2 + 5e-2 * float(jnp.max(jnp.abs(ref_feat)))
    tol_log = 1e-2 + 5e-2 * float(jnp.max(jnp.abs(ref_logits)))
    assert float(jnp.max(jnp.abs(out_feature - ref_feat))) < tol_feat, \
        float(jnp.max(jnp.abs(out_feature - ref_feat)))
    assert float(jnp.max(jnp.abs(logits - ref_logits))) < tol_log, \
        float(jnp.max(jnp.abs(logits - ref_logits)))

    print("KERNEL_OK")
</pallas_src>

<mosaic_0001>
module attributes {stable_mosaic.version = 11 : i64} {
  func.func @fused_net_kernel(%arg0: i32, %arg1: memref<8x128xf32, #tpu.memory_space<vmem>>, %arg2: memref<128x256xbf16, #tpu.memory_space<vmem>>, %arg3: memref<1x128xf32, #tpu.memory_space<vmem>>, %arg4: memref<1x128xf32, #tpu.memory_space<vmem>>, %arg5: memref<128x128xbf16, #tpu.memory_space<vmem>>, %arg6: memref<1x128xf32, #tpu.memory_space<vmem>>, %arg7: memref<128x256xbf16, #tpu.memory_space<vmem>>, %arg8: memref<1x128xf32, #tpu.memory_space<vmem>>, %arg9: memref<1x128xf32, #tpu.memory_space<vmem>>, %arg10: memref<128x128xbf16, #tpu.memory_space<vmem>>, %arg11: memref<1x128xf32, #tpu.memory_space<vmem>>, %arg12: memref<128x256xbf16, #tpu.memory_space<vmem>>, %arg13: memref<1x128xf32, #tpu.memory_space<vmem>>, %arg14: memref<1x128xf32, #tpu.memory_space<vmem>>, %arg15: memref<128x128xbf16, #tpu.memory_space<vmem>>, %arg16: memref<1x128xf32, #tpu.memory_space<vmem>>, %arg17: memref<128x256xbf16, #tpu.memory_space<vmem>>, %arg18: memref<1x128xf32, #tpu.memory_space<vmem>>, %arg19: memref<1x128xf32, #tpu.memory_space<vmem>>, %arg20: memref<128x128xbf16, #tpu.memory_space<vmem>>, %arg21: memref<1x128xf32, #tpu.memory_space<vmem>>, %arg22: memref<128x128xbf16, #tpu.memory_space<vmem>>, %arg23: memref<1x128xf32, #tpu.memory_space<vmem>>, %arg24: memref<128x128xbf16, #tpu.memory_space<vmem>>, %arg25: memref<1x128xf32, #tpu.memory_space<vmem>>, %arg26: memref<1x128xf32, #tpu.memory_space<vmem>>, %arg27: memref<1x1xf32, #tpu.memory_space<vmem>>, %arg28: memref<8x1xf32, #tpu.memory_space<vmem>>, %arg29: memref<8x128xf32, #tpu.memory_space<vmem>>) attributes {dimension_semantics = [#tpu.dimension_semantics<arbitrary>], iteration_bounds = array<i64: 1>, scalar_prefetch = 0 : i64, scratch_operands = 0 : i64, tpu.core_type = #tpu.core_type<tc>, window_params = [{pipeline_mode = #tpu.pipeline_mode<synchronous>, transform_indices = @transform_0, window_bounds = array<i64: 8, 128>}, {pipeline_mode = #tpu.pipeline_mode<synchronous>, transform_indices = @transform_1, window_bounds = array<i64: 128, 256>}, {pipeline_mode = #tpu.pipeline_mode<synchronous>, transform_indices = @transform_2, window_bounds = array<i64: 1, 128>}, {pipeline_mode = #tpu.pipeline_mode<synchronous>, transform_indices = @transform_3, window_bounds = array<i64: 1, 128>}, {pipeline_mode = #tpu.pipeline_mode<synchronous>, transform_indices = @transform_4, window_bounds = array<i64: 128, 128>}, {pipeline_mode = #tpu.pipeline_mode<synchronous>, transform_indices = @transform_5, window_bounds = array<i64: 1, 128>}, {pipeline_mode = #tpu.pipeline_mode<synchronous>, transform_indices = @transform_6, window_bounds = array<i64: 128, 256>}, {pipeline_mode = #tpu.pipeline_mode<synchronous>, transform_indices = @transform_7, window_bounds = array<i64: 1, 128>}, {pipeline_mode = #tpu.pipeline_mode<synchronous>, transform_indices = @transform_8, window_bounds = array<i64: 1, 128>}, {pipeline_mode = #tpu.pipeline_mode<synchronous>, transform_indices = @transform_9, window_bounds = array<i64: 128, 128>}, {pipeline_mode = #tpu.pipeline_mode<synchronous>, transform_indices = @transform_10, window_bounds = array<i64: 1, 128>}, {pipeline_mode = #tpu.pipeline_mode<synchronous>, transform_indices = @transform_11, window_bounds = array<i64: 128, 256>}, {pipeline_mode = #tpu.pipeline_mode<synchronous>, transform_indices = @transform_12, window_bounds = array<i64: 1, 128>}, {pipeline_mode = #tpu.pipeline_mode<synchronous>, transform_indices = @transform_13, window_bounds = array<i64: 1, 128>}, {pipeline_mode = #tpu.pipeline_mode<synchronous>, transform_indices = @transform_14, window_bounds = array<i64: 128, 128>}, {pipeline_mode = #tpu.pipeline_mode<synchronous>, transform_indices = @transform_15, window_bounds = array<i64: 1, 128>}, {pipeline_mode = #tpu.pipeline_mode<synchronous>, transform_indices = @transform_16, window_bounds = array<i64: 128, 256>}, {pipeline_mode = #tpu.pipeline_mode<synchronous>, transform_indices = @transform_17, window_bounds = array<i64: 1, 128>}, {pipeline_mode = #tpu.pipeline_mode<synchronous>, transform_indices = @transform_18, window_bounds = array<i64: 1, 128>}, {pipeline_mode = #tpu.pipeline_mode<synchronous>, transform_indices = @transform_19, window_bounds = array<i64: 128, 128>}, {pipeline_mode = #tpu.pipeline_mode<synchronous>, transform_indices = @transform_20, window_bounds = array<i64: 1, 128>}, {pipeline_mode = #tpu.pipeline_mode<synchronous>, transform_indices = @transform_21, window_bounds = array<i64: 128, 128>}, {pipeline_mode = #tpu.pipeline_mode<synchronous>, transform_indices = @transform_22, window_bounds = array<i64: 1, 128>}, {pipeline_mode = #tpu.pipeline_mode<synchronous>, transform_indices = @transform_23, window_bounds = array<i64: 128, 128>}, {pipeline_mode = #tpu.pipeline_mode<synchronous>, transform_indices = @transform_24, window_bounds = array<i64: 1, 128>}, {pipeline_mode = #tpu.pipeline_mode<synchronous>, transform_indices = @transform_25, window_bounds = array<i64: 1, 128>}, {pipeline_mode = #tpu.pipeline_mode<synchronous>, transform_indices = @transform_26, window_bounds = array<i64: 1, 1>}, {pipeline_mode = #tpu.pipeline_mode<synchronous>, transform_indices = @transform_27, window_bounds = array<i64: 8, 1>}, {pipeline_mode = #tpu.pipeline_mode<synchronous>, transform_indices = @transform_28, window_bounds = array<i64: 8, 128>}]} {
    %c0 = arith.constant 0 : index
    %c0_0 = arith.constant 0 : index
    %0 = vector.load %arg1[%c0, %c0_0] : memref<8x128xf32, #tpu.memory_space<vmem>>, vector<8x128xf32>
    %c0_1 = arith.constant 0 : index
    %c0_2 = arith.constant 0 : index
    %1 = vector.load %arg2[%c0_1, %c0_2] : memref<128x256xbf16, #tpu.memory_space<vmem>>, vector<128x256xbf16>
    %c0_3 = arith.constant 0 : index
    %c0_4 = arith.constant 0 : index
    %2 = vector.load %arg3[%c0_3, %c0_4] : memref<1x128xf32, #tpu.memory_space<vmem>>, vector<1x128xf32>
    %c0_5 = arith.constant 0 : index
    %c0_6 = arith.constant 0 : index
    %3 = vector.load %arg4[%c0_5, %c0_6] : memref<1x128xf32, #tpu.memory_space<vmem>>, vector<1x128xf32>
    %c0_7 = arith.constant 0 : index
    %c0_8 = arith.constant 0 : index
    %4 = vector.load %arg5[%c0_7, %c0_8] : memref<128x128xbf16, #tpu.memory_space<vmem>>, vector<128x128xbf16>
    %c0_9 = arith.constant 0 : index
    %c0_10 = arith.constant 0 : index
    %5 = vector.load %arg6[%c0_9, %c0_10] : memref<1x128xf32, #tpu.memory_space<vmem>>, vector<1x128xf32>
    %6 = arith.truncf %0 : vector<8x128xf32> to vector<8x128xbf16>
    %cst = arith.constant dense<0.000000e+00> : vector<8x256xf32>
    %7 = tpu.matmul %6, %1, %cst {dimension_numbers = #tpu.dot_dimension_numbers<[1], [0], [0], [1], [0, 0, 1, 1], [], []>} : vector<8x128xbf16>, vector<128x256xbf16>, vector<8x256xf32> -> vector<8x256xf32>
    %8 = vector.extract_strided_slice %7 {offsets = [0, 0], sizes = [8, 128], strides = [1, 1]} : vector<8x256xf32> to vector<8x128xf32>
    %9 = vector.broadcast %2 : vector<1x128xf32> to vector<8x128xf32>
    %10 = arith.addf %8, %9 : vector<8x128xf32>
    %cst_11 = arith.constant 0.000000e+00 : f32
    %11 = vector.broadcast %cst_11 : f32 to vector<8x128xf32>
    %12 = arith.maximumf %10, %11 : vector<8x128xf32>
    %13 = vector.extract_strided_slice %7 {offsets = [0, 128], sizes = [8, 128], strides = [1, 1]} : vector<8x256xf32> to vector<8x128xf32>
    %14 = vector.broadcast %3 : vector<1x128xf32> to vector<8x128xf32>
    %15 = arith.addf %13, %14 : vector<8x128xf32>
    %16 = arith.truncf %12 : vector<8x128xf32> to vector<8x128xbf16>
    %cst_12 = arith.constant dense<0.000000e+00> : vector<8x128xf32>
    %17 = tpu.matmul %16, %4, %cst_12 {dimension_numbers = #tpu.dot_dimension_numbers<[1], [0], [0], [1], [0, 0, 1, 1], [], []>} : vector<8x128xbf16>, vector<128x128xbf16>, vector<8x128xf32> -> vector<8x128xf32>
    %18 = vector.broadcast %5 : vector<1x128xf32> to vector<8x128xf32>
    %19 = arith.addf %17, %18 : vector<8x128xf32>
    %20 = arith.addf %19, %15 : vector<8x128xf32>
    %cst_13 = arith.constant 0.000000e+00 : f32
    %21 = vector.broadcast %cst_13 : f32 to vector<8x128xf32>
    %22 = arith.maximumf %20, %21 : vector<8x128xf32>
    %c0_14 = arith.constant 0 : index
    %c0_15 = arith.constant 0 : index
    %23 = vector.load %arg7[%c0_14, %c0_15] : memref<128x256xbf16, #tpu.memory_space<vmem>>, vector<128x256xbf16>
    %c0_16 = arith.constant 0 : index
    %c0_17 = arith.constant 0 : index
    %24 = vector.load %arg8[%c0_16, %c0_17] : memref<1x128xf32, #tpu.memory_space<vmem>>, vector<1x128xf32>
    %c0_18 = arith.constant 0 : index
    %c0_19 = arith.constant 0 : index
    %25 = vector.load %arg9[%c0_18, %c0_19] : memref<1x128xf32, #tpu.memory_space<vmem>>, vector<1x128xf32>
    %c0_20 = arith.constant 0 : index
    %c0_21 = arith.constant 0 : index
    %26 = vector.load %arg10[%c0_20, %c0_21] : memref<128x128xbf16, #tpu.memory_space<vmem>>, vector<128x128xbf16>
    %c0_22 = arith.constant 0 : index
    %c0_23 = arith.constant 0 : index
    %27 = vector.load %arg11[%c0_22, %c0_23] : memref<1x128xf32, #tpu.memory_space<vmem>>, vector<1x128xf32>
    %28 = arith.truncf %22 : vector<8x128xf32> to vector<8x128xbf16>
    %cst_24 = arith.constant dense<0.000000e+00> : vector<8x256xf32>
    %29 = tpu.matmul %28, %23, %cst_24 {dimension_numbers = #tpu.dot_dimension_numbers<[1], [0], [0], [1], [0, 0, 1, 1], [], []>} : vector<8x128xbf16>, vector<128x256xbf16>, vector<8x256xf32> -> vector<8x256xf32>
    %30 = vector.extract_strided_slice %29 {offsets = [0, 0], sizes = [8, 128], strides = [1, 1]} : vector<8x256xf32> to vector<8x128xf32>
    %31 = vector.broadcast %24 : vector<1x128xf32> to vector<8x128xf32>
    %32 = arith.addf %30, %31 : vector<8x128xf32>
    %cst_25 = arith.constant 0.000000e+00 : f32
    %33 = vector.broadcast %cst_25 : f32 to vector<8x128xf32>
    %34 = arith.maximumf %32, %33 : vector<8x128xf32>
    %35 = vector.extract_strided_slice %29 {offsets = [0, 128], sizes = [8, 128], strides = [1, 1]} : vector<8x256xf32> to vector<8x128xf32>
    %36 = vector.broadcast %25 : vector<1x128xf32> to vector<8x128xf32>
    %37 = arith.addf %35, %36 : vector<8x128xf32>
    %38 = arith.truncf %34 : vector<8x128xf32> to vector<8x128xbf16>
    %cst_26 = arith.constant dense<0.000000e+00> : vector<8x128xf32>
    %39 = tpu.matmul %38, %26, %cst_26 {dimension_numbers = #tpu.dot_dimension_numbers<[1], [0], [0], [1], [0, 0, 1, 1], [], []>} : vector<8x128xbf16>, vector<128x128xbf16>, vector<8x128xf32> -> vector<8x128xf32>
    %40 = vector.broadcast %27 : vector<1x128xf32> to vector<8x128xf32>
    %41 = arith.addf %39, %40 : vector<8x128xf32>
    %42 = arith.addf %41, %37 : vector<8x128xf32>
    %cst_27 = arith.constant 0.000000e+00 : f32
    %43 = vector.broadcast %cst_27 : f32 to vector<8x128xf32>
    %44 = arith.maximumf %42, %43 : vector<8x128xf32>
    %c0_28 = arith.constant 0 : index
    %c0_29 = arith.constant 0 : index
    %45 = vector.load %arg12[%c0_28, %c0_29] : memref<128x256xbf16, #tpu.memory_space<vmem>>, vector<128x256xbf16>
    %c0_30 = arith.constant 0 : index
    %c0_31 = arith.constant 0 : index
    %46 = vector.load %arg13[%c0_30, %c0_31] : memref<1x128xf32, #tpu.memory_space<vmem>>, vector<1x128xf32>
    %c0_32 = arith.constant 0 : index
    %c0_33 = arith.constant 0 : index
    %47 = vector.load %arg14[%c0_32, %c0_33] : memref<1x128xf32, #tpu.memory_space<vmem>>, vector<1x128xf32>
    %c0_34 = arith.constant 0 : index
    %c0_35 = arith.constant 0 : index
    %48 = vector.load %arg15[%c0_34, %c0_35] : memref<128x128xbf16, #tpu.memory_space<vmem>>, vector<128x128xbf16>
    %c0_36 = arith.constant 0 : index
    %c0_37 = arith.constant 0 : index
    %49 = vector.load %arg16[%c0_36, %c0_37] : memref<1x128xf32, #tpu.memory_space<vmem>>, vector<1x128xf32>
    %50 = arith.truncf %44 : vector<8x128xf32> to vector<8x128xbf16>
    %cst_38 = arith.constant dense<0.000000e+00> : vector<8x256xf32>
    %51 = tpu.matmul %50, %45, %cst_38 {dimension_numbers = #tpu.dot_dimension_numbers<[1], [0], [0], [1], [0, 0, 1, 1], [], []>} : vector<8x128xbf16>, vector<128x256xbf16>, vector<8x256xf32> -> vector<8x256xf32>
    %52 = vector.extract_strided_slice %51 {offsets = [0, 0], sizes = [8, 128], strides = [1, 1]} : vector<8x256xf32> to vector<8x128xf32>
    %53 = vector.broadcast %46 : vector<1x128xf32> to vector<8x128xf32>
    %54 = arith.addf %52, %53 : vector<8x128xf32>
    %cst_39 = arith.constant 0.000000e+00 : f32
    %55 = vector.broadcast %cst_39 : f32 to vector<8x128xf32>
    %56 = arith.maximumf %54, %55 : vector<8x128xf32>
    %57 = vector.extract_strided_slice %51 {offsets = [0, 128], sizes = [8, 128], strides = [1, 1]} : vector<8x256xf32> to vector<8x128xf32>
    %58 = vector.broadcast %47 : vector<1x128xf32> to vector<8x128xf32>
    %59 = arith.addf %57, %58 : vector<8x128xf32>
    %60 = arith.truncf %56 : vector<8x128xf32> to vector<8x128xbf16>
    %cst_40 = arith.constant dense<0.000000e+00> : vector<8x128xf32>
    %61 = tpu.matmul %60, %48, %cst_40 {dimension_numbers = #tpu.dot_dimension_numbers<[1], [0], [0], [1], [0, 0, 1, 1], [], []>} : vector<8x128xbf16>, vector<128x128xbf16>, vector<8x128xf32> -> vector<8x128xf32>
    %62 = vector.broadcast %49 : vector<1x128xf32> to vector<8x128xf32>
    %63 = arith.addf %61, %62 : vector<8x128xf32>
    %64 = arith.addf %63, %59 : vector<8x128xf32>
    %cst_41 = arith.constant 0.000000e+00 : f32
    %65 = vector.broadcast %cst_41 : f32 to vector<8x128xf32>
    %66 = arith.maximumf %64, %65 : vector<8x128xf32>
    %c0_42 = arith.constant 0 : index
    %c0_43 = arith.constant 0 : index
    %67 = vector.load %arg17[%c0_42, %c0_43] : memref<128x256xbf16, #tpu.memory_space<vmem>>, vector<128x256xbf16>
    %c0_44 = arith.constant 0 : index
    %c0_45 = arith.constant 0 : index
    %68 = vector.load %arg18[%c0_44, %c0_45] : memref<1x128xf32, #tpu.memory_space<vmem>>, vector<1x128xf32>
    %c0_46 = arith.constant 0 : index
    %c0_47 = arith.constant 0 : index
    %69 = vector.load %arg19[%c0_46, %c0_47] : memref<1x128xf32, #tpu.memory_space<vmem>>, vector<1x128xf32>
    %c0_48 = arith.constant 0 : index
    %c0_49 = arith.constant 0 : index
    %70 = vector.load %arg20[%c0_48, %c0_49] : memref<128x128xbf16, #tpu.memory_space<vmem>>, vector<128x128xbf16>
    %c0_50 = arith.constant 0 : index
    %c0_51 = arith.constant 0 : index
    %71 = vector.load %arg21[%c0_50, %c0_51] : memref<1x128xf32, #tpu.memory_space<vmem>>, vector<1x128xf32>
    %72 = arith.truncf %66 : vector<8x128xf32> to vector<8x128xbf16>
    %cst_52 = arith.constant dense<0.000000e+00> : vector<8x256xf32>
    %73 = tpu.matmul %72, %67, %cst_52 {dimension_numbers = #tpu.dot_dimension_numbers<[1], [0], [0], [1], [0, 0, 1, 1], [], []>} : vector<8x128xbf16>, vector<128x256xbf16>, vector<8x256xf32> -> vector<8x256xf32>
    %74 = vector.extract_strided_slice %73 {offsets = [0, 0], sizes = [8, 128], strides = [1, 1]} : vector<8x256xf32> to vector<8x128xf32>
    %75 = vector.broadcast %68 : vector<1x128xf32> to vector<8x128xf32>
    %76 = arith.addf %74, %75 : vector<8x128xf32>
    %cst_53 = arith.constant 0.000000e+00 : f32
    %77 = vector.broadcast %cst_53 : f32 to vector<8x128xf32>
    %78 = arith.maximumf %76, %77 : vector<8x128xf32>
    %79 = vector.extract_strided_slice %73 {offsets = [0, 128], sizes = [8, 128], strides = [1, 1]} : vector<8x256xf32> to vector<8x128xf32>
    %80 = vector.broadcast %69 : vector<1x128xf32> to vector<8x128xf32>
    %81 = arith.addf %79, %80 : vector<8x128xf32>
    %82 = arith.truncf %78 : vector<8x128xf32> to vector<8x128xbf16>
    %cst_54 = arith.constant dense<0.000000e+00> : vector<8x128xf32>
    %83 = tpu.matmul %82, %70, %cst_54 {dimension_numbers = #tpu.dot_dimension_numbers<[1], [0], [0], [1], [0, 0, 1, 1], [], []>} : vector<8x128xbf16>, vector<128x128xbf16>, vector<8x128xf32> -> vector<8x128xf32>
    %84 = vector.broadcast %71 : vector<1x128xf32> to vector<8x128xf32>
    %85 = arith.addf %83, %84 : vector<8x128xf32>
    %86 = arith.addf %85, %81 : vector<8x128xf32>
    %cst_55 = arith.constant 0.000000e+00 : f32
    %87 = vector.broadcast %cst_55 : f32 to vector<8x128xf32>
    %88 = arith.maximumf %86, %87 : vector<8x128xf32>
    %c0_56 = arith.constant 0 : index
    %c0_57 = arith.constant 0 : index
    %89 = vector.load %arg22[%c0_56, %c0_57] : memref<128x128xbf16, #tpu.memory_space<vmem>>, vector<128x128xbf16>
    %c0_58 = arith.constant 0 : index
    %c0_59 = arith.constant 0 : index
    %90 = vector.load %arg23[%c0_58, %c0_59] : memref<1x128xf32, #tpu.memory_space<vmem>>, vector<1x128xf32>
    %c0_60 = arith.constant 0 : index
    %c0_61 = arith.constant 0 : index
    %91 = vector.load %arg24[%c0_60, %c0_61] : memref<128x128xbf16, #tpu.memory_space<vmem>>, vector<128x128xbf16>
    %c0_62 = arith.constant 0 : index
    %c0_63 = arith.constant 0 : index
    %92 = vector.load %arg25[%c0_62, %c0_63] : memref<1x128xf32, #tpu.memory_space<vmem>>, vector<1x128xf32>
    %93 = arith.truncf %88 : vector<8x128xf32> to vector<8x128xbf16>
    %cst_64 = arith.constant dense<0.000000e+00> : vector<8x128xf32>
    %94 = tpu.matmul %93, %89, %cst_64 {dimension_numbers = #tpu.dot_dimension_numbers<[1], [0], [0], [1], [0, 0, 1, 1], [], []>} : vector<8x128xbf16>, vector<128x128xbf16>, vector<8x128xf32> -> vector<8x128xf32>
    %95 = vector.broadcast %90 : vector<1x128xf32> to vector<8x128xf32>
    %96 = arith.addf %94, %95 : vector<8x128xf32>
    %cst_65 = arith.constant 0.000000e+00 : f32
    %97 = vector.broadcast %cst_65 : f32 to vector<8x128xf32>
    %98 = arith.maximumf %96, %97 : vector<8x128xf32>
    %99 = arith.truncf %98 : vector<8x128xf32> to vector<8x128xbf16>
    %cst_66 = arith.constant dense<0.000000e+00> : vector<8x128xf32>
    %100 = tpu.matmul %99, %91, %cst_66 {dimension_numbers = #tpu.dot_dimension_numbers<[1], [0], [0], [1], [0, 0, 1, 1], [], []>} : vector<8x128xbf16>, vector<128x128xbf16>, vector<8x128xf32> -> vector<8x128xf32>
    %101 = vector.broadcast %92 : vector<1x128xf32> to vector<8x128xf32>
    %102 = arith.addf %100, %101 : vector<8x128xf32>
    %103 = arith.addf %102, %88 : vector<8x128xf32>
    %cst_67 = arith.constant 0.000000e+00 : f32
    %104 = vector.broadcast %cst_67 : f32 to vector<8x128xf32>
    %105 = arith.maximumf %103, %104 : vector<8x128xf32>
    %c0_68 = arith.constant 0 : index
    %c0_69 = arith.constant 0 : index
    %106 = vector.load %arg26[%c0_68, %c0_69] : memref<1x128xf32, #tpu.memory_space<vmem>>, vector<1x128xf32>
    %c0_70 = arith.constant 0 : index
    %c0_71 = arith.constant 0 : index
    %107 = vector.load %arg27[%c0_70, %c0_71] : memref<1x1xf32, #tpu.memory_space<vmem>>, vector<1x1xf32>
    %c0_72 = arith.constant 0 : index
    %c0_73 = arith.constant 0 : index
    %108 = vector.load %arg29[%c0_72, %c0_73] : memref<8x128xf32, #tpu.memory_space<vmem>>, vector<8x128xf32>
    tpu.vector_store %arg29[%c0_72, %c0_73], %105 {strides = array<i32>} : memref<8x128xf32, #tpu.memory_space<vmem>>, vector<8x128xf32>,
    %109 = vector.broadcast %106 : vector<1x128xf32> to vector<8x128xf32>
    %110 = arith.mulf %105, %109 : vector<8x128xf32>
    %cst_74 = arith.constant dense<0.000000e+00> : vector<8xf32>
    %111 = vector.multi_reduction <add>, %110, %cst_74 [1] : vector<8x128xf32> to vector<8xf32>
    %112 = vector.shape_cast %111 : vector<8xf32> to vector<8x1xf32>
    %113 = vector.broadcast %107 : vector<1x1xf32> to vector<8x1xf32>
    %114 = arith.addf %112, %113 : vector<8x1xf32>
    %c0_75 = arith.constant 0 : index
    %c0_76 = arith.constant 0 : index
    %115 = vector.load %arg28[%c0_75, %c0_76] : memref<8x1xf32, #tpu.memory_space<vmem>>, vector<8x1xf32>
    tpu.vector_store %arg28[%c0_75, %c0_76], %114 {strides = array<i32>} : memref<8x1xf32, #tpu.memory_space<vmem>>, vector<8x1xf32>,
    return
  }
  func.func @transform_0(%arg0: i32) -> (i32, i32) {
    %c0_i32 = arith.constant 0 : i32
    %c0_i32_0 = arith.constant 0 : i32
    %c0_i32_1 = arith.constant 0 : i32
    return %c0_i32, %c0_i32_0 : i32, i32
  }
  func.func @transform_1(%arg0: i32) -> (i32, i32) {
    %c0_i32 = arith.constant 0 : i32
    %c0_i32_0 = arith.constant 0 : i32
    %c0_i32_1 = arith.constant 0 : i32
    return %c0_i32, %c0_i32_0 : i32, i32
  }
  func.func @transform_2(%arg0: i32) -> (i32, i32) {
    %c0_i32 = arith.constant 0 : i32
    %c0_i32_0 = arith.constant 0 : i32
    %c0_i32_1 = arith.constant 0 : i32
    return %c0_i32, %c0_i32_0 : i32, i32
  }
  func.func @transform_3(%arg0: i32) -> (i32, i32) {
    %c0_i32 = arith.constant 0 : i32
    %c0_i32_0 = arith.constant 0 : i32
    %c0_i32_1 = arith.constant 0 : i32
    return %c0_i32, %c0_i32_0 : i32, i32
  }
  func.func @transform_4(%arg0: i32) -> (i32, i32) {
    %c0_i32 = arith.constant 0 : i32
    %c0_i32_0 = arith.constant 0 : i32
    %c0_i32_1 = arith.constant 0 : i32
    return %c0_i32, %c0_i32_0 : i32, i32
  }
  func.func @transform_5(%arg0: i32) -> (i32, i32) {
    %c0_i32 = arith.constant 0 : i32
    %c0_i32_0 = arith.constant 0 : i32
    %c0_i32_1 = arith.constant 0 : i32
    return %c0_i32, %c0_i32_0 : i32, i32
  }
  func.func @transform_6(%arg0: i32) -> (i32, i32) {
    %c0_i32 = arith.constant 0 : i32
    %c0_i32_0 = arith.constant 0 : i32
    %c0_i32_1 = arith.constant 0 : i32
    return %c0_i32, %c0_i32_0 : i32, i32
  }
  func.func @transform_7(%arg0: i32) -> (i32, i32) {
    %c0_i32 = arith.constant 0 : i32
    %c0_i32_0 = arith.constant 0 : i32
    %c0_i32_1 = arith.constant 0 : i32
    return %c0_i32, %c0_i32_0 : i32, i32
  }
  func.func @transform_8(%arg0: i32) -> (i32, i32) {
    %c0_i32 = arith.constant 0 : i32
    %c0_i32_0 = arith.constant 0 : i32
    %c0_i32_1 = arith.constant 0 : i32
    return %c0_i32, %c0_i32_0 : i32, i32
  }
  func.func @transform_9(%arg0: i32) -> (i32, i32) {
    %c0_i32 = arith.constant 0 : i32
    %c0_i32_0 = arith.constant 0 : i32
    %c0_i32_1 = arith.constant 0 : i32
    return %c0_i32, %c0_i32_0 : i32, i32
  }
  func.func @transform_10(%arg0: i32) -> (i32, i32) {
    %c0_i32 = arith.constant 0 : i32
    %c0_i32_0 = arith.constant 0 : i32
    %c0_i32_1 = arith.constant 0 : i32
    return %c0_i32, %c0_i32_0 : i32, i32
  }
  func.func @transform_11(%arg0: i32) -> (i32, i32) {
    %c0_i32 = arith.constant 0 : i32
    %c0_i32_0 = arith.constant 0 : i32
    %c0_i32_1 = arith.constant 0 : i32
    return %c0_i32, %c0_i32_0 : i32, i32
  }
  func.func @transform_12(%arg0: i32) -> (i32, i32) {
    %c0_i32 = arith.constant 0 : i32
    %c0_i32_0 = arith.constant 0 : i32
    %c0_i32_1 = arith.constant 0 : i32
    return %c0_i32, %c0_i32_0 : i32, i32
  }
  func.func @transform_13(%arg0: i32) -> (i32, i32) {
    %c0_i32 = arith.constant 0 : i32
    %c0_i32_0 = arith.constant 0 : i32
    %c0_i32_1 = arith.constant 0 : i32
    return %c0_i32, %c0_i32_0 : i32, i32
  }
  func.func @transform_14(%arg0: i32) -> (i32, i32) {
    %c0_i32 = arith.constant 0 : i32
    %c0_i32_0 = arith.constant 0 : i32
    %c0_i32_1 = arith.constant 0 : i32
    return %c0_i32, %c0_i32_0 : i32, i32
  }
  func.func @transform_15(%arg0: i32) -> (i32, i32) {
    %c0_i32 = arith.constant 0 : i32
    %c0_i32_0 = arith.constant 0 : i32
    %c0_i32_1 = arith.constant 0 : i32
    return %c0_i32, %c0_i32_0 : i32, i32
  }
  func.func @transform_16(%arg0: i32) -> (i32, i32) {
    %c0_i32 = arith.constant 0 : i32
    %c0_i32_0 = arith.constant 0 : i32
    %c0_i32_1 = arith.constant 0 : i32
    return %c0_i32, %c0_i32_0 : i32, i32
  }
  func.func @transform_17(%arg0: i32) -> (i32, i32) {
    %c0_i32 = arith.constant 0 : i32
    %c0_i32_0 = arith.constant 0 : i32
    %c0_i32_1 = arith.constant 0 : i32
    return %c0_i32, %c0_i32_0 : i32, i32
  }
  func.func @transform_18(%arg0: i32) -> (i32, i32) {
    %c0_i32 = arith.constant 0 : i32
    %c0_i32_0 = arith.constant 0 : i32
    %c0_i32_1 = arith.constant 0 : i32
    return %c0_i32, %c0_i32_0 : i32, i32
  }
  func.func @transform_19(%arg0: i32) -> (i32, i32) {
    %c0_i32 = arith.constant 0 : i32
    %c0_i32_0 = arith.constant 0 : i32
    %c0_i32_1 = arith.constant 0 : i32
    return %c0_i32, %c0_i32_0 : i32, i32
  }
  func.func @transform_20(%arg0: i32) -> (i32, i32) {
    %c0_i32 = arith.constant 0 : i32
    %c0_i32_0 = arith.constant 0 : i32
    %c0_i32_1 = arith.constant 0 : i32
    return %c0_i32, %c0_i32_0 : i32, i32
  }
  func.func @transform_21(%arg0: i32) -> (i32, i32) {
    %c0_i32 = arith.constant 0 : i32
    %c0_i32_0 = arith.constant 0 : i32
    %c0_i32_1 = arith.constant 0 : i32
    return %c0_i32, %c0_i32_0 : i32, i32
  }
  func.func @transform_22(%arg0: i32) -> (i32, i32) {
    %c0_i32 = arith.constant 0 : i32
    %c0_i32_0 = arith.constant 0 : i32
    %c0_i32_1 = arith.constant 0 : i32
    return %c0_i32, %c0_i32_0 : i32, i32
  }
  func.func @transform_23(%arg0: i32) -> (i32, i32) {
    %c0_i32 = arith.constant 0 : i32
    %c0_i32_0 = arith.constant 0 : i32
    %c0_i32_1 = arith.constant 0 : i32
    return %c0_i32, %c0_i32_0 : i32, i32
  }
  func.func @transform_24(%arg0: i32) -> (i32, i32) {
    %c0_i32 = arith.constant 0 : i32
    %c0_i32_0 = arith.constant 0 : i32
    %c0_i32_1 = arith.constant 0 : i32
    return %c0_i32, %c0_i32_0 : i32, i32
  }
  func.func @transform_25(%arg0: i32) -> (i32, i32) {
    %c0_i32 = arith.constant 0 : i32
    %c0_i32_0 = arith.constant 0 : i32
    %c0_i32_1 = arith.constant 0 : i32
    return %c0_i32, %c0_i32_0 : i32, i32
  }
  func.func @transform_26(%arg0: i32) -> (i32, i32) {
    %c0_i32 = arith.constant 0 : i32
    %c0_i32_0 = arith.constant 0 : i32
    %c0_i32_1 = arith.constant 0 : i32
    return %c0_i32, %c0_i32_0 : i32, i32
  }
  func.func @transform_27(%arg0: i32) -> (i32, i32) {
    %c0_i32 = arith.constant 0 : i32
    %c0_i32_0 = arith.constant 0 : i32
    %c0_i32_1 = arith.constant 0 : i32
    return %c0_i32, %c0_i32_0 : i32, i32
  }
  func.func @transform_28(%arg0: i32) -> (i32, i32) {
    %c0_i32 = arith.constant 0 : i32
    %c0_i32_0 = arith.constant 0 : i32
    %c0_i32_1 = arith.constant 0 : i32
    return %c0_i32, %c0_i32_0 : i32, i32
  }
}

</mosaic_0001>

<bundles_post_ra>
// kernel: _fused_forward.1
= control target key start
LH: loop header
LB: loop body
LE: loop exit
PB: predicated region body
PF: predicated region fallthrough
CT: control target
= control target key end

     0   :  { %s2421_s0 = inlined_call_operand.vmem [shape: f32[8,128], index: 0, kind: input, shape index: {}]   ;;  %s2422_s1 = inlined_call_operand.hbm [shape: bf16[128,256], index: 1, kind: input, shape index: {}]   ;;  %s2423_s2 = inlined_call_operand.vmem [shape: f32[1,128], index: 2, kind: input, shape index: {}]   ;;  %s2424_s3 = inlined_call_operand.vmem [shape: f32[1,128], index: 3, kind: input, shape index: {}]   ;;  %s2425_s4 = inlined_call_operand.hbm [shape: bf16[128,128], index: 4, kind: input, shape index: {}]   ;;  %s2426_s5 = inlined_call_operand.vmem [shape: f32[1,128], index: 5, kind: input, shape index: {}]   ;;  %s2427_s6 = inlined_call_operand.hbm [shape: bf16[128,256], index: 6, kind: input, shape index: {}]   ;;  %s2428_s7 = inlined_call_operand.vmem [shape: f32[1,128], index: 7, kind: input, shape index: {}]   ;;  %s2429_s8 = inlined_call_operand.vmem [shape: f32[1,128], index: 8, kind: input, shape index: {}]   ;;  %s2430_s9 = inlined_call_operand.hbm [shape: bf16[128,128], index: 9, kind: input, shape index: {}]   ;;  %s2431_s10 = inlined_call_operand.vmem [shape: f32[1,128], index: 10, kind: input, shape index: {}]   ;;  %s2432_s11 = inlined_call_operand.hbm [shape: bf16[128,256], index: 11, kind: input, shape index: {}]   ;;  %s2433_s12 = inlined_call_operand.vmem [shape: f32[1,128], index: 12, kind: input, shape index: {}]   ;;  %s2434_s13 = inlined_call_operand.vmem [shape: f32[1,128], index: 13, kind: input, shape index: {}]   ;;  %s2435_s14 = inlined_call_operand.hbm [shape: bf16[128,128], index: 14, kind: input, shape index: {}]   ;;  %s2436_s15 = inlined_call_operand.vmem [shape: f32[1,128], index: 15, kind: input, shape index: {}]   ;;  %s2437_s16 = inlined_call_operand.hbm [shape: bf16[128,256], index: 16, kind: input, shape index: {}]   ;;  %s2438_s17 = inlined_call_operand.vmem [shape: f32[1,128], index: 17, kind: input, shape index: {}]   ;;  %s2439_s18 = inlined_call_operand.vmem [shape: f32[1,128], index: 18, kind: input, shape index: {}]   ;;  %s2440_s19 = inlined_call_operand.hbm [shape: bf16[128,128], index: 19, kind: input, shape index: {}]   ;;  %s2441_s20 = inlined_call_operand.vmem [shape: f32[1,128], index: 20, kind: input, shape index: {}]   ;;  %s2442_s21 = inlined_call_operand.hbm [shape: bf16[128,128], index: 21, kind: input, shape index: {}]   ;;  %s2443_s22 = inlined_call_operand.vmem [shape: f32[1,128], index: 22, kind: input, shape index: {}]   ;;  %s2444_s23 = inlined_call_operand.hbm [shape: bf16[128,128], index: 23, kind: input, shape index: {}]   ;;  %s2445_s24 = inlined_call_operand.vmem [shape: f32[1,128], index: 24, kind: input, shape index: {}]   ;;  %s2446_s25 = inlined_call_operand.vmem [shape: f32[1,128], index: 25, kind: input, shape index: {}]   ;;  %s2447_s26 = inlined_call_operand.<no memory space> [shape: f32[1,1], index: 26, kind: input, shape index: {}]   ;;  %s2448_s27 = inlined_call_operand.vmem [shape: f32[8,1], index: 27, kind: output, shape index: {0}]   ;;  %s2449_s28 = inlined_call_operand.vmem [shape: f32[8,128], index: 28, kind: output, shape index: {1}]  }
   0x1   :  { %2452 = sst [smem:[#allocation25_spill]] %s2421_s0  ;;  %v34_v0 = vstv %s2447_s26 }
   0x2   :  { %2453 = sst [smem:[#allocation26_spill]] %s2422_s1  ;;  %35 = vst [vmem:[#allocation2] sm:$0x1] %v34_v0 }
   0x3   :  { %2454 = sst [smem:[#allocation27_spill]] %s2423_s2 }
   0x4   :  { %2455 = sst [smem:[#allocation28_spill]] %s2424_s3 }
   0x5   :  { %2456 = sst [smem:[#allocation29_spill]] %s2425_s4 }
   0x6   :  { %2457 = sst [smem:[#allocation30_spill]] %s2426_s5 }
   0x7   :  { %2458 = sst [smem:[#allocation31_spill]] %s2427_s6 }
   0x8   :  { %2459 = sst [smem:[#allocation32_spill]] %s2428_s7 }
   0x9   :  { %2460 = sst [smem:[#allocation33_spill]] %s2429_s8 }
   0xa   :  { %2461 = sst [smem:[#allocation34_spill]] %s2430_s9 }
   0xb   :  { %2462 = sst [smem:[#allocation35_spill]] %s2431_s10 }
   0xc   :  { %2463 = sst [smem:[#allocation36_spill]] %s2432_s11 }
   0xd   :  { %2464 = sst [smem:[#allocation37_spill]] %s2433_s12 }
   0xe   :  { %2465 = sst [smem:[#allocation38_spill]] %s2448_s27 }
   0xf   :  { %36 = vsyncpa [#allocation4], 0 }
  0x10   :  { %37 = vsyncpa [#allocation6], 0 }
  0x11   :  { %38 = vsyncpa [#allocation9], 0 }
  0x12   :  { %39 = vsyncpa [#allocation12], 0 }
  0x13   :  { %40 = vsyncpa [#allocation15], 0  ;;  %s2466_s3 = sld [smem:[#allocation29_spill]] }
  0x19   :  { %s65_s6 = sshll.u32 %s2466_s3, 4  ;;  %s66_s6 = int_to_ptr.hbm [resolvable:$true] %s65_s6 }
  0x1a   :  { %41 = vsyncpa [#allocation18], 0  ;;  %s2157_s10 = smov [#allocation5]   ;;  %s2467_s2 = sld [smem:[#allocation34_spill]] }
  0x1b   :  { %s67_s0 = sshll.u32 %s2157_s10, 4  ;;  %s2450_s26 = smov 64   ;;  %s68_s0 = int_to_ptr.vmem [resolvable:$true] %s67_s0 }
  0x1c   :  { %s2159_s12 = smov 4   ;;  %s2160_s1 = smov [#allocation8]  }
  0x1d   :  { %73 = dma.hbm_to_vmem [thread:$0]  %s66_s6, 1024, %s68_s0, [#allocation6], %s2450_s26, %s2450_s26, %s2159_s12  }
  0x1e   :  { %s99_s4 = sshll.u32 %s2160_s1, 4  ;;  %s129_s9 = sshll.u32 %s2435_s14, 4  ;;  %s100_s4 = int_to_ptr.vmem [resolvable:$true] %s99_s4  ;;  %s130_s9 = int_to_ptr.hbm [resolvable:$true] %s129_s9 }
  0x1f   :  { %s161_s10 = sshll.u32 %s2440_s19, 4  ;;  %s2161_s11 = smov [#allocation11]   ;;  %s162_s10 = int_to_ptr.hbm [resolvable:$true] %s161_s10 }
  0x20   :  { %s97_s7 = sshll.u32 %s2467_s2, 4  ;;  %s131_s29 = sshll.u32 %s2161_s11, 4  ;;  %s98_s7 = int_to_ptr.hbm [resolvable:$true] %s97_s7  ;;  %s132_s29 = int_to_ptr.vmem [resolvable:$true] %s131_s29 }
  0x21   :  { %105 = dma.hbm_to_vmem [thread:$0]  %s98_s7, 1024, %s100_s4, [#allocation9], %s2450_s26, %s2450_s26, %s2159_s12  }
  0x22   :  { %137 = dma.hbm_to_vmem [thread:$0]  %s130_s9, 1024, %s132_s29, [#allocation12], %s2450_s26, %s2450_s26, %s2159_s12  }
  0x23   :  { %s2162_s6 = smov [#allocation14]   ;;  %s2468_s1 = sld [smem:[#allocation26_spill]] }
  0x24   :  { %s163_s14 = sshll.u32 %s2162_s6, 4  ;;  %s2163_s19 = smov [#allocation3]   ;;  %s164_s14 = int_to_ptr.vmem [resolvable:$true] %s163_s14 }
  0x25   :  { %169 = dma.hbm_to_vmem [thread:$0]  %s162_s10, 1024, %s164_s14, [#allocation15], %s2450_s26, %s2450_s26, %s2159_s12  }
  0x26   :  { %s50_s7 = sshll.u32 %s2163_s19, 4  ;;  %s2469_s30 = sld [smem:[#allocation31_spill]]  ;;  %s51_s7 = int_to_ptr.vmem [resolvable:$true] %s50_s7 }
  0x27   :  { %s2164_s9 = smov 128   ;;  %s2165_s11 = smov 8  }
  0x28   :  { %s2166_s29 = smov [#allocation7]   ;;  %s144_s19 = sshll.u32 %s2437_s16, 4  ;;  %s145_s19 = int_to_ptr.hbm [resolvable:$true] %s144_s19 }
  0x29   :  { %s48_s8 = sshll.u32 %s2468_s1, 4  ;;  %s82_s6 = sshll.u32 %s2166_s29, 4  ;;  %s49_s8 = int_to_ptr.hbm [resolvable:$true] %s48_s8  ;;  %s83_s6 = int_to_ptr.vmem [resolvable:$true] %s82_s6 }
  0x2a   :  { %56 = dma.hbm_to_vmem [thread:$0]  %s49_s8, 2048, %s51_s7, [#allocation4], %s2164_s9, %s2164_s9, %s2165_s11  }
  0x2b   :  { %s2470_s1 = sld [smem:[#allocation36_spill]]  ;;  %s2167_s26 = smov [#allocation10]  }
  0x2c   :  { %s80_s3 = sshll.u32 %s2469_s30, 4  ;;  %s114_s4 = sshll.u32 %s2167_s26, 4  ;;  %s81_s3 = int_to_ptr.hbm [resolvable:$true] %s80_s3  ;;  %s115_s4 = int_to_ptr.vmem [resolvable:$true] %s114_s4 }
  0x2d   :  { %88 = dma.hbm_to_vmem [thread:$0]  %s81_s3, 2048, %s83_s6, [#allocation6], %s2164_s9, %s2164_s9, %s2165_s11  }
  0x2e   :  { %s2168_s8 = smov [#allocation13]   ;;  %s176_s29 = sshll.u32 %s2442_s21, 4  ;;  %s177_s29 = int_to_ptr.hbm [resolvable:$true] %s176_s29 }
  0x2f   :  { %s146_s7 = sshll.u32 %s2168_s8, 4  ;;  %s191_s6 = sshll.u32 %s2444_s23, 4  ;;  %s147_s7 = int_to_ptr.vmem [resolvable:$true] %s146_s7  ;;  %s192_s6 = int_to_ptr.hbm [resolvable:$true] %s191_s6 }
  0x30   :  { %152 = dma.hbm_to_vmem [thread:$0]  %s145_s19, 2048, %s147_s7, [#allocation12], %s2164_s9, %s2164_s9, %s2165_s11  }
  0x31   :  { %s112_s27 = sshll.u32 %s2470_s1, 4  ;;  %s2169_s2 = smov [#allocation16]   ;;  %s113_s27 = int_to_ptr.hbm [resolvable:$true] %s112_s27 }
  0x32   :  { %120 = dma.hbm_to_vmem [thread:$0]  %s113_s27, 2048, %s115_s4, [#allocation9], %s2164_s9, %s2164_s9, %s2165_s11  }
  0x33   :  { %s178_s16 = sshll.u32 %s2169_s2, 4  ;;  %s2471_s26 = smov 64   ;;  %s179_s16 = int_to_ptr.vmem [resolvable:$true] %s178_s16 }
  0x34   :  { %184 = dma.hbm_to_vmem [thread:$0]  %s177_s29, 1024, %s179_s16, [#allocation15], %s2471_s26, %s2471_s26, %s2159_s12  }
  0x35   :  { %s2170_s27 = smov [#allocation17]  }
  0x36   :  { %s193_s1 = sshll.u32 %s2170_s27, 4  ;;  %s194_s1 = int_to_ptr.vmem [resolvable:$true] %s193_s1 }
  0x37   :  { %199 = dma.hbm_to_vmem [thread:$0]  %s192_s6, 1024, %s194_s1, [#allocation18], %s2471_s26, %s2471_s26, %s2159_s12  }
  0x38   :  { %2145 = dma.done.wait [#allocation4], 2048  }
  0x39   :  { %2146 = vsyncadd [#allocation4], 4294965248 }
  0x3a   :  { %2147 = dma.done.wait [#allocation6], 3072  }
  0x3b   :  { %2148 = vsyncadd [#allocation6], 4294964224 }
  0x3c   :  { %2149 = dma.done.wait [#allocation9], 3072  }
  0x3d   :  { %2150 = vsyncadd [#allocation9], 4294964224 }
  0x3e   :  { %2151 = dma.done.wait [#allocation12], 3072  }
  0x3f   :  { %2152 = vsyncadd [#allocation12], 4294964224 }
  0x40   :  { %2153 = dma.done.wait [#allocation15], 2048  }
  0x41   :  { %2154 = vsyncadd [#allocation15], 4294965248 }
  0x42   :  { %2155 = dma.done.wait [#allocation18], 1024  }
  0x43   :  { %2156 = vsyncadd [#allocation18], 4294966272  ;;  %v1373_v1 = vld [vmem:[#allocation3 + $0x70] sm:$0xf]  ;;  %v1778_v2 = vld [vmem:[#allocation3 + $0x74] sm:$0xf0] }
  0x44   :  { %v1365_v3 = vld [vmem:[#allocation3 + $0x60] sm:$0xf]  ;;  %v1374_v4 = vor.u32 %v1778_v2, %v1373_v1  ;;  %v1776_v5 = vld [vmem:[#allocation3 + $0x64] sm:$0xf0]  ;;  %v1357_v7 = vld [vmem:[#allocation3 + $0x50] sm:$0xf] }
  0x45   :  { %v1366_v6 = vor.u32 %v1776_v5, %v1365_v3  ;;  %v1774_v8 = vld [vmem:[#allocation3 + $0x54] sm:$0xf0]  ;;  %v1777_v9 = vld [vmem:[#allocation3 + $0x74] sm:$0xf]  ;;  %v1375_v10 = vld [vmem:[#allocation3 + $0x78] sm:$0xf0] }
  0x46   :  { %363 = vmatpush.bf16.msra.mxu0 %v1374_v4  ;;  %v1786_v11 = vld [vmem:[#allocation5 + $0x38] sm:$0xff]  ;;  %v1775_v12 = vld [vmem:[#allocation3 + $0x64] sm:$0xf]  ;;  %v1358_v13 = vor.u32 %v1774_v8, %v1357_v7  ;;  %v1378_v14 = vor.u32 %v1777_v9, %v1375_v10  ;;  %v1367_v15 = vld [vmem:[#allocation3 + $0x68] sm:$0xf0]  ;;  %s2472_s12 = sld [smem:[#allocation25_spill]] }
  0x47   :  { %v1349_v16 = vld [vmem:[#allocation3 + $0x40] sm:$0xf]  ;;  %v1772_v17 = vld [vmem:[#allocation3 + $0x44] sm:$0xf0]  ;;  %450 = vmatpush.bf16.msra.mxu2 %v1786_v11  ;;  %v1785_v18 = vld [vmem:[#allocation5 + $0x30] sm:$0xff]  ;;  %v1370_v19 = vor.u32 %v1775_v12, %v1367_v15  ;;  %s2473_s10 = sld [smem:[#allocation27_spill]] }
  0x48   :  { %376 = vmatpush.bf16.msra.mxu1 %v1378_v14  ;;  %v1773_v20 = vld [vmem:[#allocation3 + $0x54] sm:$0xf]  ;;  %v1359_v21 = vld [vmem:[#allocation3 + $0x58] sm:$0xf0]  ;;  %v1350_v22 = vor.u32 %v1772_v17, %v1349_v16  ;;  %v1341_v23 = vld [vmem:[#allocation3 + $0x30] sm:$0xf] }
  0x49   :  { %v1770_v24 = vld [vmem:[#allocation3 + $0x34] sm:$0xf0]  ;;  %v1784_v25 = vld [vmem:[#allocation5 + $0x28] sm:$0xff]  ;;  %v1771_v26 = vld [vmem:[#allocation3 + $0x44] sm:$0xf]  ;;  %v1362_v28 = vor.u32 %v1773_v20, %v1359_v21  ;;  %s2474_s4 = sld [smem:[#allocation28_spill]] }
  0x4a   :  { %364 = vmatpush.bf16.msra.mxu0 %v1366_v6  ;;  %v1351_v27 = vld [vmem:[#allocation3 + $0x48] sm:$0xf0]  ;;  %v1333_v29 = vld [vmem:[#allocation3 + $0x20] sm:$0xf]  ;;  %v1768_v30 = vld [vmem:[#allocation3 + $0x24] sm:$0xf0]  ;;  %v1342_v32 = vor.u32 %v1770_v24, %v1341_v23 }
  0x4b   :  { %451 = vmatpush.bf16.msra.mxu2 %v1785_v18  ;;  %v1783_v31 = vld [vmem:[#allocation5 + $0x20] sm:$0xff]  ;;  %v1354_v33 = vor.u32 %v1771_v26, %v1351_v27  ;;  %v1769_v34 = vld [vmem:[#allocation3 + $0x34] sm:$0xf]  ;;  %v1343_v35 = vld [vmem:[#allocation3 + $0x38] sm:$0xf0]  ;;  %v1334_v36 = vor.u32 %v1768_v30, %v1333_v29  ;;  %s2475_s5 = sld [smem:[#allocation30_spill]] }
  0x4c   :  { %377 = vmatpush.bf16.msra.mxu1 %v1370_v19  ;;  %v1325_v37 = vld [vmem:[#allocation3 + $0x10] sm:$0xf]  ;;  %v1766_v38 = vld [vmem:[#allocation3 + $0x14] sm:$0xf0]  ;;  %v1346_v40 = vor.u32 %v1769_v34, %v1343_v35  ;;  %v1767_v41 = vld [vmem:[#allocation3 + $0x24] sm:$0xf] }
  0x4d   :  { %v1782_v39 = vld [vmem:[#allocation5 + $0x18] sm:$0xff]  ;;  %v1335_v42 = vld [vmem:[#allocation3 + $0x28] sm:$0xf0]  ;;  %v1326_v43 = vor.u32 %v1766_v38, %v1325_v37  ;;  %v1317_v44 = vld [vmem:[#allocation3] sm:$0xf]  ;;  %s2476_s0 = sld [smem:[#allocation32_spill]] }
  0x4e   :  { %365 = vmatpush.bf16.msra.mxu0 %v1358_v13  ;;  %v1764_v45 = vld [vmem:[#allocation3 + $0x4] sm:$0xf0]  ;;  %v1781_v46 = vld [vmem:[#allocation5 + $0x10] sm:$0xff]  ;;  %v1338_v47 = vor.u32 %v1767_v41, %v1335_v42  ;;  %v1327_v49 = vld [vmem:[#allocation3 + $0x18] sm:$0xf0]  ;;  %s2477_s2 = sld [smem:[#allocation33_spill]] }
  0x4f   :  { %452 = vmatpush.bf16.msra.mxu2 %v1784_v25  ;;  %v1765_v48 = vld [vmem:[#allocation3 + $0x14] sm:$0xf]  ;;  %v1318_v50 = vor.u32 %v1764_v45, %v1317_v44  ;;  %v246_v51 = vld [vmem:[%s2472_s12] sm:$0xff]  ;;  %v1780_v54 = vld [vmem:[#allocation5 + $0x8] sm:$0xff]  ;;  %s2478_s27 = sld [smem:[#allocation35_spill]]  ;;  %vm1299_vm0 = vcmask 7168  }
  0x50   :  { %378 = vmatpush.bf16.msra.mxu1 %v1362_v28  ;;  %v1330_v52 = vor.u32 %v1765_v48, %v1327_v49  ;;  %v282_v53 = vpack.c.bf16 %v246_v51, %v246_v51  ;;  %v1763_v55 = vld [vmem:[#allocation3 + $0x4] sm:$0xf]  ;;  %v1319_v56 = vld [vmem:[#allocation3 + $0x8] sm:$0xf0]  ;;  %v1469_v59 = vld [vmem:[#allocation7 + $0x70] sm:$0xf] }
  0x51   :  { %v1322_v57 = vor.u32 %v1763_v55, %v1319_v56  ;;  %v1779_v58 = vld [vmem:[#allocation5] sm:$0xff]  ;;  %v1802_v60 = vld [vmem:[#allocation7 + $0x74] sm:$0xf0]  ;;  %v1801_v61 = vld [vmem:[#allocation7 + $0x74] sm:$0xf]  ;;  %s2479_s23 = sld [smem:[#allocation37_spill]] }
  0x52   :  { %366 = vmatpush.bf16.msra.mxu0 %v1350_v22  ;;  %v1470_v62 = vor.u32 %v1802_v60, %v1469_v59  ;;  %v1471_v63 = vld [vmem:[#allocation7 + $0x78] sm:$0xf0]  ;;  %v1461_v0 = vld [vmem:[#allocation7 + $0x60] sm:$0xf]  ;;  %v1800_v1 = vld [vmem:[#allocation7 + $0x64] sm:$0xf0] }
  0x53   :  { %453 = vmatpush.bf16.msra.mxu2 %v1783_v31  ;;  %v1474_v2 = vor.u32 %v1801_v61, %v1471_v63  ;;  %v1799_v3 = vld [vmem:[#allocation7 + $0x64] sm:$0xf]  ;;  %v1463_v4 = vld [vmem:[#allocation7 + $0x68] sm:$0xf0]  ;;  %v1462_v5 = vor.u32 %v1800_v1, %v1461_v0  ;;  %v1453_v7 = vld [vmem:[#allocation7 + $0x50] sm:$0xf] }
  0x54   :  { %379 = vmatpush.bf16.msra.mxu1 %v1354_v33  ;;  %581 = vmatpush.bf16.msra.mxu3 %v1470_v62  ;;  %v1466_v6 = vor.u32 %v1799_v3, %v1463_v4  ;;  %v1798_v8 = vld [vmem:[#allocation7 + $0x54] sm:$0xf0]  ;;  %v1797_v9 = vld [vmem:[#allocation7 + $0x54] sm:$0xf]  ;;  %v1455_v10 = vld [vmem:[#allocation7 + $0x58] sm:$0xf0] }
  0x55   :  { %v1454_v11 = vor.u32 %v1798_v8, %v1453_v7  ;;  %v1458_v12 = vor.u32 %v1797_v9, %v1455_v10  ;;  %v1445_v13 = vld [vmem:[#allocation7 + $0x40] sm:$0xf]  ;;  %v1796_v14 = vld [vmem:[#allocation7 + $0x44] sm:$0xf0]  ;;  %v1795_v15 = vld [vmem:[#allocation7 + $0x44] sm:$0xf] }
  0x56   :  { %367 = vmatpush.bf16.msra.mxu0 %v1342_v32  ;;  %v1447_v16 = vld [vmem:[#allocation7 + $0x48] sm:$0xf0]  ;;  %v1446_v17 = vor.u32 %v1796_v14, %v1445_v13  ;;  %v1889_v19 = vld [vmem:[%s2473_s10] ss:$0 sm:$0xff]  ;;  %v1437_v25 = vld [vmem:[#allocation7 + $0x30] sm:$0xf] }
  0x57   :  { %454 = vmatpush.bf16.msra.mxu2 %v1782_v39  ;;  %v1450_v18 = vor.u32 %v1795_v15, %v1447_v16  ;;  %v1794_v26 = vld [vmem:[#allocation7 + $0x34] sm:$0xf0]  ;;  %v1793_v27 = vld [vmem:[#allocation7 + $0x34] sm:$0xf]  ;;  %v1439_v29 = vld [vmem:[#allocation7 + $0x38] sm:$0xf0] }
  0x58   :  { %380 = vmatpush.bf16.msra.mxu1 %v1346_v40  ;;  %582 = vmatpush.bf16.msra.mxu3 %v1462_v5  ;;  %v1438_v28 = vor.u32 %v1794_v26, %v1437_v25  ;;  %v1429_v30 = vld [vmem:[#allocation7 + $0x20] sm:$0xf]  ;;  %v1792_v31 = vld [vmem:[#allocation7 + $0x24] sm:$0xf0]  ;;  %v1442_v32 = vor.u32 %v1793_v27, %v1439_v29  ;;  %v1791_v33 = vld [vmem:[#allocation7 + $0x24] sm:$0xf] }
  0x59   :  { %v1431_v34 = vld [vmem:[#allocation7 + $0x28] sm:$0xf0]  ;;  %v1430_v35 = vor.u32 %v1792_v31, %v1429_v30  ;;  %v1421_v38 = vld [vmem:[#allocation7 + $0x10] sm:$0xf]  ;;  %v1790_v39 = vld [vmem:[#allocation7 + $0x14] sm:$0xf0] }
  0x5a   :  { %368 = vmatpush.bf16.msra.mxu0 %v1334_v36  ;;  %v1434_v36 = vor.u32 %v1791_v33, %v1431_v34  ;;  %v1789_v40 = vld [vmem:[#allocation7 + $0x14] sm:$0xf]  ;;  %v1422_v42 = vor.u32 %v1790_v39, %v1421_v38  ;;  %v1413_v45 = vld [vmem:[#allocation7] sm:$0xf]  ;;  %v1415_v49 = vld [vmem:[#allocation7 + $0x8] sm:$0xf0] }
  0x5b   :  { %455 = vmatpush.bf16.msra.mxu2 %v1781_v46  ;;  %v1788_v46 = vld [vmem:[#allocation7 + $0x4] sm:$0xf0]  ;;  %v1810_v51 = vld [vmem:[#allocation8 + $0x38] sm:$0xff]  ;;  %v1805_v1 = vld [vmem:[#allocation8 + $0x10] sm:$0xff]  ;;  %s2480_s3 = sld [smem:[#allocation38_spill]] }
  0x5c   :  { %381 = vmatpush.bf16.msra.mxu1 %v1338_v47  ;;  %583 = vmatpush.bf16.msra.mxu3 %v1454_v11  ;;  %v1787_v47 = vld [vmem:[#allocation7 + $0x4] sm:$0xf]  ;;  %v1414_v48 = vor.u32 %v1788_v46, %v1413_v45  ;;  %v1806_v55 = vld [vmem:[#allocation8 + $0x18] sm:$0xff]  ;;  %v1565_v4 = vld [vmem:[#allocation10 + $0x70] sm:$0xf] }
  0x5d   :  { %v1890_v56 = vld [vmem:[%s2474_s4] ss:$0 sm:$0xff]  ;;  %v1803_v3 = vld [vmem:[#allocation8] sm:$0xff]  ;;  %v1826_v5 = vld [vmem:[#allocation10 + $0x74] sm:$0xf0] }
  0x5e   :  { %369 = vmatpush.bf16.msra.mxu0 %v1326_v43  ;;  %v1423_v43 = vld [vmem:[#allocation7 + $0x18] sm:$0xf0]  ;;  %v1566_v7 = vor.u32 %v1826_v5, %v1565_v4  ;;  %v1557_v9 = vld [vmem:[#allocation10 + $0x60] sm:$0xf]  ;;  %v1824_v10 = vld [vmem:[#allocation10 + $0x64] sm:$0xf0] }
  0x5f   :  { %456 = vmatpush.bf16.msra.mxu2 %v1780_v54  ;;  %v1426_v44 = vor.u32 %v1789_v40, %v1423_v43  ;;  %v1807_v54 = vld [vmem:[#allocation8 + $0x20] sm:$0xff]  ;;  %v1567_v8 = vld [vmem:[#allocation10 + $0x78] sm:$0xf0]  ;;  %v1559_v13 = vld [vmem:[#allocation10 + $0x68] sm:$0xf0]  ;;  %v1558_v14 = vor.u32 %v1824_v10, %v1557_v9 }
  0x60   :  { %382 = vmatpush.bf16.msra.mxu1 %v1330_v52  ;;  %584 = vmatpush.bf16.msra.mxu3 %v1446_v17  ;;  %v1809_v52 = vld [vmem:[#allocation8 + $0x30] sm:$0xff]  ;;  %v1822_v17 = vld [vmem:[#allocation10 + $0x54] sm:$0xf0]  ;;  %v1543_v25 = vld [vmem:[#allocation10 + $0x48] sm:$0xf0] }
  0x61   :  { %v1549_v16 = vld [vmem:[#allocation10 + $0x50] sm:$0xf]  ;;  %v1818_v29 = vld [vmem:[#allocation10 + $0x34] sm:$0xf0]  ;;  %v1817_v30 = vld [vmem:[#allocation10 + $0x34] sm:$0xf] }
  0x62   :  { %370 = vmatpush.bf16.msra.mxu0 %v1318_v50  ;;  %v1418_v50 = vor.u32 %v1787_v47, %v1415_v49  ;;  %v1535_v31 = vld [vmem:[#allocation10 + $0x38] sm:$0xf0]  ;;  %v1525_v34 = vld [vmem:[#allocation10 + $0x20] sm:$0xf]  ;;  %v1814_v49 = vld [vmem:[#allocation10 + $0x14] sm:$0xf0] }
  0x63   :  { %457 = vmatpush.bf16.msra.mxu2 %v1779_v58  ;;  %v1538_v33 = vor.u32 %v1817_v30, %v1535_v31  ;;  %v1637_v31 = vld [vmem:[#allocation13 + $0x40] sm:$0xf] }
  0x64   :  { %383 = vmatpush.bf16.msra.mxu1 %v1322_v57  ;;  %585 = vmatpush.bf16.msra.mxu3 %v1438_v28  ;;  %v1891_v57 = vld [vmem:[%s2475_s5] ss:$0 sm:$0xff]  ;;  %v1533_v28 = vld [vmem:[#allocation10 + $0x30] sm:$0xf] }
  0x65   :  { %371 = vmatmul.bf16.vlgmr.msra.gmra.mxu0 %v282_v53 }
  0x66   :  { %594 = vmatpush.bf16.msrb.mxu0 %v1474_v2  ;;  %v1804_v2 = vld [vmem:[#allocation8 + $0x8] sm:$0xff] }
  0x67   :  { %384 = vmatmul.bf16.vlgmr.msra.gmra.mxu1 %v282_v53  ;;  %v1808_v53 = vld [vmem:[#allocation8 + $0x28] sm:$0xff]  ;;  %799 = vmatpush.bf16.msrb.mxu2 %v1566_v7 }
  0x68   :  { %586 = vmatpush.bf16.msra.mxu3 %v1430_v35  ;;  %668 = vmatpush.bf16.msrb.mxu1 %v1810_v51  ;;  %v1816_v35 = vld [vmem:[#allocation10 + $0x24] sm:$0xf0] }
  0x69   :  { %v1526_v39 = vor.u32 %v1816_v35, %v1525_v34  ;;  %v1639_v34 = vld [vmem:[#allocation13 + $0x48] sm:$0xf0] }
  0x6a   :  { %595 = vmatpush.bf16.msrb.mxu0 %v1466_v6  ;;  %v1825_v6 = vld [vmem:[#allocation10 + $0x74] sm:$0xf] }
  0x6b   :  { %v1570_v11 = vor.u32 %v1825_v6, %v1567_v8  ;;  %800 = vmatpush.bf16.msrb.mxu2 %v1558_v14  ;;  %v1850_v14 = vld [vmem:[#allocation13 + $0x74] sm:$0xf0] }
  0x6c   :  { %587 = vmatpush.bf16.msra.mxu3 %v1422_v42  ;;  %669 = vmatpush.bf16.msrb.mxu1 %v1809_v52  ;;  %v1519_v52 = vld [vmem:[#allocation10 + $0x18] sm:$0xf0] }
  0x6e   :  { %596 = vmatpush.bf16.msrb.mxu0 %v1458_v12  ;;  %v1823_v12 = vld [vmem:[#allocation10 + $0x64] sm:$0xf] }
  0x6f   :  { %v1562_v15 = vor.u32 %v1823_v12, %v1559_v13  ;;  %v1827_v12 = vld [vmem:[#allocation11] sm:$0xff]  ;;  %v1661_v13 = vld [vmem:[#allocation13 + $0x70] sm:$0xf] }
  0x70   :  { %588 = vmatpush.bf16.msra.mxu3 %v1414_v48  ;;  %670 = vmatpush.bf16.msrb.mxu1 %v1808_v53  ;;  %v1517_v48 = vld [vmem:[#allocation10 + $0x10] sm:$0xf] }
  0x71   :  { %v1518_v51 = vor.u32 %v1814_v49, %v1517_v48  ;;  %v1895_v49 = vld [vmem:[%s2479_s23] ss:$0 sm:$0xff] }
  0x72   :  { %597 = vmatpush.bf16.msrb.mxu0 %v1450_v18  ;;  %v1821_v18 = vld [vmem:[#allocation10 + $0x54] sm:$0xf] }
  0x74   :  { %671 = vmatpush.bf16.msrb.mxu1 %v1807_v54  ;;  %812 = vmatpush.bf16.msrb.mxu3 %v1570_v11  ;;  %v1509_v54 = vld [vmem:[#allocation10] sm:$0xf]  ;;  %v1828_v11 = vld [vmem:[#allocation11 + $0x8] sm:$0xff] }
  0x76   :  { %598 = vmatpush.bf16.msrb.mxu0 %v1442_v32  ;;  %v1534_v32 = vor.u32 %v1818_v29, %v1533_v28  ;;  %v1647_v28 = vld [vmem:[#allocation13 + $0x58] sm:$0xf0] }
  0x78   :  { %672 = vmatpush.bf16.msrb.mxu1 %v1806_v55  ;;  %813 = vmatpush.bf16.msrb.mxu3 %v1562_v15  ;;  %v1812_v55 = vld [vmem:[#allocation10 + $0x4] sm:$0xf0]  ;;  %v1849_v15 = vld [vmem:[#allocation13 + $0x74] sm:$0xf] }
  0x7a   :  { %599 = vmatpush.bf16.msrb.mxu0 %v1434_v36  ;;  %v1815_v36 = vld [vmem:[#allocation10 + $0x24] sm:$0xf] }
  0x7c   :  { %673 = vmatpush.bf16.msrb.mxu1 %v1805_v1  ;;  %v1829_v1 = vld [vmem:[#allocation11 + $0x10] sm:$0xff] }
  0x7e   :  { %600 = vmatpush.bf16.msrb.mxu0 %v1426_v44 }
  0x80   :  { %674 = vmatpush.bf16.msrb.mxu1 %v1804_v2  ;;  %v1892_v2 = vld [vmem:[%s2477_s2] ss:$0 sm:$0xff] }
  0x82   :  { %601 = vmatpush.bf16.msrb.mxu0 %v1418_v50  ;;  %v1813_v50 = vld [vmem:[#allocation10 + $0x14] sm:$0xf] }
  0x83   :  { %v1522_v53 = vor.u32 %v1813_v50, %v1519_v52 }
  0x84   :  { %675 = vmatpush.bf16.msrb.mxu1 %v1803_v3  ;;  %v1894_v3 = vld [vmem:[%s2478_s27] ss:$0 sm:$0xff] }
  0xe2   :  { %v372_v20 = vpop.f32.mrf.mxu0 }
  0xe3   :  { %v392_v21 = vadd.f32 %v1889_v19, %v372_v20  ;;  %v1551_v19 = vld [vmem:[#allocation10 + $0x58] sm:$0xf0]  ;;  %v1550_v20 = vor.u32 %v1822_v17, %v1549_v16  ;;  %v1662_v16 = vor.u32 %v1850_v14, %v1661_v13 }
  0xe4   :  { %v385_v37 = vpop.f32.mrf.mxu1  ;;  %v1663_v17 = vld [vmem:[#allocation13 + $0x78] sm:$0xf0] }
  0xe5   :  { %v393_v22 = vmax.f32 %v392_v21, 0.0  ;;  %v397_v58 = vadd.f32 %v1890_v56, %v385_v37  ;;  %v1554_v21 = vor.u32 %v1821_v18, %v1551_v19  ;;  %801 = vmatpush.bf16.msrb.mxu2 %v1550_v20  ;;  %v1527_v37 = vld [vmem:[#allocation10 + $0x28] sm:$0xf0]  ;;  %v1811_v56 = vld [vmem:[#allocation10 + $0x4] sm:$0xf]  ;;  %v1666_v20 = vor.u32 %v1849_v15, %v1663_v17  ;;  %1017 = vmatpush.bf16.msra.mxu1 %v1662_v16 }
  0xe6   :  { %v1530_v40 = vor.u32 %v1815_v36, %v1527_v37  ;;  %v1653_v18 = vld [vmem:[#allocation13 + $0x60] sm:$0xf]  ;;  %v1848_v19 = vld [vmem:[#allocation13 + $0x64] sm:$0xf0]  ;;  %v1629_v37 = vld [vmem:[#allocation13 + $0x30] sm:$0xf] }
  0xe7   :  { %v398_v23 = vpack.c.bf16 %v393_v22, %v393_v22  ;;  %v1541_v22 = vld [vmem:[#allocation10 + $0x40] sm:$0xf]  ;;  %814 = vmatpush.bf16.msrb.mxu3 %v1554_v21  ;;  %v1847_v21 = vld [vmem:[#allocation13 + $0x64] sm:$0xf] }
  0xe9   :  { %458 = vmatmul.bf16.vlgmr.msra.gmra.mxu2 %v398_v23  ;;  %v1820_v23 = vld [vmem:[#allocation10 + $0x44] sm:$0xf0] }
  0xea   :  { %v374_v24 = vpop.f32.mrf.mxu0  ;;  %v1542_v26 = vor.u32 %v1820_v23, %v1541_v22  ;;  %v1655_v22 = vld [vmem:[#allocation13 + $0x68] sm:$0xf0]  ;;  %v1654_v23 = vor.u32 %v1848_v19, %v1653_v18 }
  0xeb   :  { %v1819_v24 = vld [vmem:[#allocation10 + $0x44] sm:$0xf] }
  0xec   :  { %v387_v41 = vpop.f32.mrf.mxu1  ;;  %v1546_v27 = vor.u32 %v1819_v24, %v1543_v25  ;;  %802 = vmatpush.bf16.msrb.mxu2 %v1542_v26  ;;  %v1658_v24 = vor.u32 %v1847_v21, %v1655_v22  ;;  %v1645_v25 = vld [vmem:[#allocation13 + $0x50] sm:$0xf]  ;;  %v1846_v26 = vld [vmem:[#allocation13 + $0x54] sm:$0xf0]  ;;  %1018 = vmatpush.bf16.msra.mxu1 %v1654_v23  ;;  %v1851_v21 = vld [vmem:[#allocation14] sm:$0xff] }
  0xed   :  { %v1893_v41 = vld [vmem:[%s2476_s0] ss:$0 sm:$0xff]  ;;  %v1646_v29 = vor.u32 %v1846_v26, %v1645_v25  ;;  %v1865_v23 = vld [vmem:[#allocation16 + $0x30] sm:$0xff]  ;;  %v1863_v25 = vld [vmem:[#allocation16 + $0x20] sm:$0xff] }
  0xee   :  { %815 = vmatpush.bf16.msrb.mxu3 %v1546_v27  ;;  %v1845_v27 = vld [vmem:[#allocation13 + $0x54] sm:$0xf]  ;;  %v1866_v22 = vld [vmem:[#allocation16 + $0x38] sm:$0xff] }
  0xef   :  { %v1650_v30 = vor.u32 %v1845_v27, %v1647_v28  ;;  %v1862_v26 = vld [vmem:[#allocation16 + $0x18] sm:$0xff] }
  0xf0   :  { %803 = vmatpush.bf16.msrb.mxu2 %v1534_v32  ;;  %v1844_v32 = vld [vmem:[#allocation13 + $0x44] sm:$0xf0]  ;;  %1019 = vmatpush.bf16.msra.mxu1 %v1646_v29  ;;  %v1898_v27 = vld [vmem:[%s2438_s17] ss:$0 sm:$0xff]  ;;  %v1861_v29 = vld [vmem:[#allocation16 + $0x10] sm:$0xff] }
  0xf1   :  { %v1638_v35 = vor.u32 %v1844_v32, %v1637_v31 }
  0xf2   :  { %816 = vmatpush.bf16.msrb.mxu3 %v1538_v33  ;;  %v1843_v33 = vld [vmem:[#allocation13 + $0x44] sm:$0xf] }
  0xf3   :  { %v1642_v36 = vor.u32 %v1843_v33, %v1639_v34 }
  0xf4   :  { %804 = vmatpush.bf16.msrb.mxu2 %v1526_v39  ;;  %v1841_v39 = vld [vmem:[#allocation13 + $0x34] sm:$0xf]  ;;  %1020 = vmatpush.bf16.msra.mxu1 %v1638_v35 }
  0xf6   :  { %817 = vmatpush.bf16.msrb.mxu3 %v1530_v40  ;;  %v1631_v40 = vld [vmem:[#allocation13 + $0x38] sm:$0xf0] }
  0xf8   :  { %805 = vmatpush.bf16.msrb.mxu2 %v1518_v51 }
  0xfa   :  { %818 = vmatpush.bf16.msrb.mxu3 %v1522_v53 }
 0x16c   :  { %v459_v59 = vpop.f32.mrf.mxu2 }
 0x16d   :  { %v460_v60 = vadd.f32 %v1891_v57, %v459_v59  ;;  %v1510_v57 = vor.u32 %v1812_v55, %v1509_v54 }
 0x16f   :  { %v463_v61 = vadd.f32 %v460_v60, %v397_v58  ;;  %v1511_v58 = vld [vmem:[#allocation10 + $0x8] sm:$0xf0]  ;;  %806 = vmatpush.bf16.msrb.mxu2 %v1510_v57  ;;  %v1834_v60 = vld [vmem:[#allocation11 + $0x38] sm:$0xff]  ;;  %v1613_v57 = vld [vmem:[#allocation13 + $0x10] sm:$0xf] }
 0x170   :  { %v1514_v59 = vor.u32 %v1811_v56, %v1511_v58  ;;  %886 = vmatpush.bf16.msra.mxu0 %v1834_v60  ;;  %v1838_v58 = vld [vmem:[#allocation13 + $0x14] sm:$0xf0] }
 0x171   :  { %v464_v62 = vmax.f32 %v463_v61, 0.0  ;;  %v1833_v61 = vld [vmem:[#allocation11 + $0x30] sm:$0xff]  ;;  %v1614_v60 = vor.u32 %v1838_v58, %v1613_v57 }
 0x172   :  { %819 = vmatpush.bf16.msrb.mxu3 %v1514_v59  ;;  %v1837_v59 = vld [vmem:[#allocation13 + $0x14] sm:$0xf] }
 0x173   :  { %v500_v63 = vpack.c.bf16 %v464_v62, %v464_v62  ;;  %v1832_v62 = vld [vmem:[#allocation11 + $0x28] sm:$0xff]  ;;  %1030 = vmatpush.bf16.msra.mxu2 %v1666_v20 }
 0x174   :  { %v461_v0 = vpop.f32.mrf.mxu2  ;;  %887 = vmatpush.bf16.msra.mxu0 %v1833_v61  ;;  %v1615_v61 = vld [vmem:[#allocation13 + $0x18] sm:$0xf0]  ;;  %v1852_v20 = vld [vmem:[#allocation14 + $0x8] sm:$0xff] }
 0x175   :  { %589 = vmatmul.bf16.vlgmr.msra.gmra.mxu3 %v500_v63  ;;  %602 = vmatmul.bf16.vlgmr.msrb.gmra.mxu0 %v500_v63  ;;  %v1831_v63 = vld [vmem:[#allocation11 + $0x20] sm:$0xff]  ;;  %v1830_v0 = vld [vmem:[#allocation11 + $0x18] sm:$0xff] }
 0x177   :  { %1031 = vmatpush.bf16.msra.mxu2 %v1658_v24  ;;  %v1864_v24 = vld [vmem:[#allocation16 + $0x28] sm:$0xff] }
 0x178   :  { %888 = vmatpush.bf16.msra.mxu0 %v1832_v62  ;;  %v1618_v62 = vor.u32 %v1837_v59, %v1615_v61  ;;  %v1902_v61 = vld [vmem:[%s2445_s24] ss:$0 sm:$0xff] }
 0x17b   :  { %1032 = vmatpush.bf16.msra.mxu2 %v1650_v30 }
 0x17c   :  { %889 = vmatpush.bf16.msra.mxu0 %v1831_v63  ;;  %v1605_v63 = vld [vmem:[#allocation13] sm:$0xf] }
 0x17f   :  { %1033 = vmatpush.bf16.msra.mxu2 %v1642_v36  ;;  %v1860_v36 = vld [vmem:[#allocation16 + $0x8] sm:$0xff] }
 0x180   :  { %890 = vmatpush.bf16.msra.mxu0 %v1830_v0  ;;  %v1836_v0 = vld [vmem:[#allocation13 + $0x4] sm:$0xf0] }
 0x184   :  { %891 = vmatpush.bf16.msra.mxu0 %v1829_v1  ;;  %v1835_v1 = vld [vmem:[#allocation13 + $0x4] sm:$0xf] }
 0x188   :  { %892 = vmatpush.bf16.msra.mxu0 %v1828_v11  ;;  %v1896_v11 = vld [vmem:[%s2434_s13] ss:$0 sm:$0xff] }
 0x18c   :  { %893 = vmatpush.bf16.msra.mxu0 %v1827_v12  ;;  %v1897_v12 = vld [vmem:[%s2436_s15] ss:$0 sm:$0xff] }
 0x190   :  { %1205 = vmatpush.bf16.msrb.mxu0 %v1866_v22 }
 0x194   :  { %1206 = vmatpush.bf16.msrb.mxu0 %v1865_v23 }
 0x198   :  { %1207 = vmatpush.bf16.msrb.mxu0 %v1864_v24 }
 0x19c   :  { %1208 = vmatpush.bf16.msrb.mxu0 %v1863_v25 }
 0x1a0   :  { %1209 = vmatpush.bf16.msrb.mxu0 %v1862_v26 }
 0x1a4   :  { %1210 = vmatpush.bf16.msrb.mxu0 %v1861_v29 }
 0x1a8   :  { %1211 = vmatpush.bf16.msrb.mxu0 %v1860_v36 }
 0x1f2   :  { %v603_v38 = vpop.f32.mrf.mxu0 }
 0x1f3   :  { %v615_v5 = vadd.f32 %v1892_v2, %v603_v38  ;;  %v1842_v38 = vld [vmem:[#allocation13 + $0x34] sm:$0xf0]  ;;  %v1606_v2 = vor.u32 %v1836_v0, %v1605_v63 }
 0x1f8   :  { %v590_v42 = vpop.f32.mrf.mxu3 }
 0x1f9   :  { %v610_v43 = vadd.f32 %v1893_v41, %v590_v42  ;;  %v1630_v41 = vor.u32 %v1842_v38, %v1629_v37  ;;  %v1634_v42 = vor.u32 %v1841_v39, %v1631_v40  ;;  %v1859_v37 = vld [vmem:[#allocation16] sm:$0xff]  ;;  %v1874_v38 = vld [vmem:[#allocation17 + $0x38] sm:$0xff]  ;;  %v1873_v39 = vld [vmem:[#allocation17 + $0x30] sm:$0xff] }
 0x1fa   :  { %v605_v44 = vpop.f32.mrf.mxu0  ;;  %1212 = vmatpush.bf16.msrb.mxu0 %v1859_v37  ;;  %v1872_v40 = vld [vmem:[#allocation17 + $0x28] sm:$0xff] }
 0x1fb   :  { %v611_v45 = vmax.f32 %v610_v43, 0.0  ;;  %v1621_v43 = vld [vmem:[#allocation13 + $0x20] sm:$0xf]  ;;  %v1840_v44 = vld [vmem:[#allocation13 + $0x24] sm:$0xf0]  ;;  %1021 = vmatpush.bf16.msra.mxu1 %v1630_v41  ;;  %1034 = vmatpush.bf16.msra.mxu2 %v1634_v42  ;;  %v1870_v42 = vld [vmem:[#allocation17 + $0x18] sm:$0xff] }
 0x1fc   :  { %v1871_v41 = vld [vmem:[#allocation17 + $0x20] sm:$0xff] }
 0x1fd   :  { %v616_v46 = vpack.c.bf16 %v611_v45, %v611_v45  ;;  %v1839_v45 = vld [vmem:[#allocation13 + $0x24] sm:$0xf] }
 0x1ff   :  { %676 = vmatmul.bf16.vlgmr.msrb.gmra.mxu1 %v616_v46  ;;  %v1623_v46 = vld [vmem:[#allocation13 + $0x28] sm:$0xf0] }
 0x200   :  { %v592_v47 = vpop.f32.mrf.mxu3  ;;  %v1626_v48 = vor.u32 %v1839_v45, %v1623_v46  ;;  %v1900_v45 = vld [vmem:[%s2441_s20] ss:$0 sm:$0xff] }
 0x201   :  { %v1622_v47 = vor.u32 %v1840_v44, %v1621_v43  ;;  %v1869_v43 = vld [vmem:[#allocation17 + $0x10] sm:$0xff]  ;;  %v1899_v44 = vld [vmem:[%s2439_s18] ss:$0 sm:$0xff] }
 0x202   :  { %1035 = vmatpush.bf16.msra.mxu2 %v1626_v48 }
 0x203   :  { %1022 = vmatpush.bf16.msra.mxu1 %v1622_v47 }
 0x206   :  { %1036 = vmatpush.bf16.msra.mxu2 %v1618_v62 }
 0x207   :  { %1023 = vmatpush.bf16.msra.mxu1 %v1614_v60 }
 0x20b   :  { %1024 = vmatpush.bf16.msra.mxu1 %v1606_v2 }
 0x20f   :  { %1271 = vmatpush.bf16.msrb.mxu1 %v1874_v38 }
 0x213   :  { %1272 = vmatpush.bf16.msrb.mxu1 %v1873_v39 }
 0x217   :  { %1273 = vmatpush.bf16.msrb.mxu1 %v1872_v40 }
 0x21b   :  { %1274 = vmatpush.bf16.msrb.mxu1 %v1871_v41 }
 0x21f   :  { %1275 = vmatpush.bf16.msrb.mxu1 %v1870_v42 }
 0x223   :  { %1276 = vmatpush.bf16.msrb.mxu1 %v1869_v43 }
 0x27c   :  { %v677_v4 = vpop.f32.mrf.mxu1 }
 0x27d   :  { %v678_v6 = vadd.f32 %v1894_v3, %v677_v4  ;;  %v1607_v3 = vld [vmem:[#allocation13 + $0x8] sm:$0xf0] }
 0x27e   :  { %v1610_v4 = vor.u32 %v1835_v1, %v1607_v3  ;;  %v1903_v1 = vld [vmem:[%s2446_s25] ss:$0 sm:$0xff] }
 0x27f   :  { %v681_v7 = vadd.f32 %v678_v6, %v615_v5  ;;  %v1858_v5 = vld [vmem:[#allocation14 + $0x38] sm:$0xff]  ;;  %v1857_v6 = vld [vmem:[#allocation14 + $0x30] sm:$0xff] }
 0x280   :  { %1037 = vmatpush.bf16.msra.mxu2 %v1610_v4  ;;  %1104 = vmatpush.bf16.msra.mxu3 %v1858_v5  ;;  %v1904_v5 = vld [vmem:[#allocation2] ss:$0 sm:$0xff] }
 0x281   :  { %v682_v8 = vmax.f32 %v681_v7, 0.0  ;;  %v1856_v7 = vld [vmem:[#allocation14 + $0x28] sm:$0xff] }
 0x283   :  { %v718_v9 = vpack.c.bf16 %v682_v8, %v682_v8  ;;  %v1855_v8 = vld [vmem:[#allocation14 + $0x20] sm:$0xff] }
 0x284   :  { %v679_v10 = vpop.f32.mrf.mxu1  ;;  %1105 = vmatpush.bf16.msra.mxu3 %v1857_v6 }
 0x285   :  { %807 = vmatmul.bf16.vlgmr.msrb.gmra.mxu2 %v718_v9  ;;  %820 = vmatmul.bf16.vlgmr.msrb.gmra.mxu3 %v718_v9  ;;  %v1854_v9 = vld [vmem:[#allocation14 + $0x18] sm:$0xff]  ;;  %v1853_v10 = vld [vmem:[#allocation14 + $0x10] sm:$0xff] }
 0x288   :  { %1106 = vmatpush.bf16.msra.mxu3 %v1856_v7 }
 0x28c   :  { %1107 = vmatpush.bf16.msra.mxu3 %v1855_v8 }
 0x290   :  { %1108 = vmatpush.bf16.msra.mxu3 %v1854_v9 }
 0x294   :  { %1109 = vmatpush.bf16.msra.mxu3 %v1853_v10 }
 0x298   :  { %1110 = vmatpush.bf16.msra.mxu3 %v1852_v20 }
 0x29c   :  { %1111 = vmatpush.bf16.msra.mxu3 %v1851_v21 }
 0x308   :  { %v808_v50 = vpop.f32.mrf.mxu2  ;;  %v821_v51 = vpop.f32.mrf.mxu3 }
 0x309   :  { %v828_v52 = vadd.f32 %v1895_v49, %v808_v50  ;;  %v833_v14 = vadd.f32 %v1896_v11, %v821_v51 }
 0x30b   :  { %v829_v53 = vmax.f32 %v828_v52, 0.0 }
 0x30d   :  { %v834_v54 = vpack.c.bf16 %v829_v53, %v829_v53  ;;  %v1868_v53 = vld [vmem:[#allocation17 + $0x8] sm:$0xff] }
 0x30e   :  { %1277 = vmatpush.bf16.msrb.mxu1 %v1868_v53 }
 0x30f   :  { %894 = vmatmul.bf16.vlgmr.msra.gmra.mxu0 %v834_v54  ;;  %v1867_v54 = vld [vmem:[#allocation17] sm:$0xff] }
 0x310   :  { %v810_v55 = vpop.f32.mrf.mxu2  ;;  %v823_v56 = vpop.f32.mrf.mxu3 }
 0x311   :  { %v1901_v55 = vld [vmem:[%s2443_s22] ss:$0 sm:$0xff] }
 0x312   :  { %1278 = vmatpush.bf16.msrb.mxu1 %v1867_v54 }
 0x38c   :  { %v895_v13 = vpop.f32.mrf.mxu0 }
 0x38d   :  { %v896_v15 = vadd.f32 %v1897_v12, %v895_v13 }
 0x38f   :  { %v899_v16 = vadd.f32 %v896_v15, %v833_v14 }
 0x391   :  { %v900_v17 = vmax.f32 %v899_v16, 0.0 }
 0x393   :  { %v936_v18 = vpack.c.bf16 %v900_v17, %v900_v17 }
 0x394   :  { %v897_v19 = vpop.f32.mrf.mxu0 }
 0x395   :  { %1025 = vmatmul.bf16.vlgmr.msra.gmra.mxu1 %v936_v18  ;;  %1038 = vmatmul.bf16.vlgmr.msra.gmra.mxu2 %v936_v18 }
 0x412   :  { %v1026_v28 = vpop.f32.mrf.mxu1 }
 0x413   :  { %v1046_v30 = vadd.f32 %v1898_v27, %v1026_v28 }
 0x415   :  { %v1047_v31 = vmax.f32 %v1046_v30, 0.0 }
 0x417   :  { %v1052_v32 = vpack.c.bf16 %v1047_v31, %v1047_v31 }
 0x418   :  { %v1039_v33 = vpop.f32.mrf.mxu2 }
 0x419   :  { %1112 = vmatmul.bf16.vlgmr.msra.gmra.mxu3 %v1052_v32  ;;  %v1051_v47 = vadd.f32 %v1899_v44, %v1039_v33 }
 0x41a   :  { %v1028_v34 = vpop.f32.mrf.mxu1 }
 0x420   :  { %v1041_v35 = vpop.f32.mrf.mxu2 }
 0x49c   :  { %v1113_v46 = vpop.f32.mrf.mxu3 }
 0x49d   :  { %v1114_v48 = vadd.f32 %v1900_v45, %v1113_v46 }
 0x49f   :  { %v1117_v49 = vadd.f32 %v1114_v48, %v1051_v47 }
 0x4a1   :  { %v1118_v50 = vmax.f32 %v1117_v49, 0.0 }
 0x4a3   :  { %v1153_v51 = vpack.c.bf16 %v1118_v50, %v1118_v50 }
 0x4a4   :  { %v1115_v52 = vpop.f32.mrf.mxu3 }
 0x4a5   :  { %1213 = vmatmul.bf16.vlgmr.msrb.gmra.mxu0 %v1153_v51 }
 0x522   :  { %v1214_v56 = vpop.f32.mrf.mxu0 }
 0x523   :  { %v1215_v57 = vadd.f32 %v1901_v55, %v1214_v56 }
 0x525   :  { %v1218_v58 = vmax.f32 %v1215_v57, 0.0 }
 0x527   :  { %v1219_v59 = vpack.c.bf16 %v1218_v58, %v1218_v58 }
 0x529   :  { %1279 = vmatmul.bf16.vlgmr.msrb.gmra.mxu1 %v1219_v59 }
 0x52a   :  { %v1216_v60 = vpop.f32.mrf.mxu0 }
 0x5a6   :  { %v1280_v62 = vpop.f32.mrf.mxu1 }
 0x5a7   :  { %v1281_v63 = vadd.f32 %v1902_v61, %v1280_v62 }
 0x5a9   :  { %v1284_v0 = vadd.f32 %v1281_v63, %v1118_v50 }
 0x5ab   :  { %v1285_v2 = vmax.f32 %v1284_v0, 0.0 }
 0x5ad   :  { %1288 = vst [vmem:[%s2449_s28] sm:$0xff] %v1285_v2  ;;  %v1292_v3 = vmul.f32 %v1903_v1, %v1285_v2 }
 0x5ae   :  { %v1282_v4 = vpop.f32.mrf.mxu1 }
 0x5af   :  { %1293 = vadd.xlane.f32.xlu0 %v1292_v3 }
 0x622   :  { %v1294_v6 = vpop.xlane.xlu0 %1293 }
 0x623   :  { %v1298_v7 = vadd.f32 %v1904_v5, %v1294_v6 }
 0x625   :  { %1300 = vst.msk [vmem:[%s2480_s3] sm:$0xff] %vm1299_vm0, %v1298_v7 }
 0x626   :  { %1309 = vsyncpa [#allocation4], 1 }
 0x627   :  { %1310 = vsyncpa [#allocation6], 1 }
 0x628   :  { %1311 = vsyncpa [#allocation9], 1 }
 0x629   :  { %1312 = vsyncpa [#allocation12], 1 }
 0x62a   :  { %1313 = vsyncpa [#allocation15], 1 }
 0x62b   :  { %1314 = vsyncpa [#allocation18], 1 }

</bundles_post_ra>
